<compile_context>
chip_gen: v6e
topology: v6e:2x2x1
jax: 0.10.0
libtpu: 0.0.40
codegen_flags: <defaults>
</compile_context>

<pallas_src>
import functools
import math

import numpy as np

import jax
import jax.numpy as jnp
from jax.experimental import pallas as pl
from jax.experimental.pallas import tpu as pltpu


def _round_up(v, m):
    return ((v + m - 1) // m) * m


# ----------------------------------------------------------------------------
# Fused kernel: all KANLinear layers + optional final softplus.
# Per layer the weight refs are:
#   bw : (In_real, Out_pad)      base weight, pre-transposed, zero-padded cols
#   sw : (K, In_real, Out_pad)   scaled spline weight, per-knot stack
# ----------------------------------------------------------------------------
def _kan_fused_kernel(x_ref, *refs, layer_dims, knots, spline_order,
                      apply_softplus, mxu_dtype):
    o_ref = refs[-1]
    w_refs = refs[:-1]
    S = spline_order
    P = len(knots)                      # grid_size + 2*spline_order + 1
    K = P - 1 - S                       # grid_size + spline_order
    f32 = jnp.float32
    n_layers = len(layer_dims)

    x = x_ref[...].astype(f32)
    for layer, (in_real, _out_pad) in enumerate(layer_dims):
        bw_ref = w_refs[2 * layer]
        sw_ref = w_refs[2 * layer + 1]

        # Drop padded lanes of the carried activation (pads are exactly zero
        # and have zero weight rows); avoids wasted VALU work on pad lanes.
        xr = x[:, :in_real]

        # ---- B-spline bases: shared-compare Cox-de Boor, all f32 ----------
        # order-0 indicators from P shared '>=' compares (hi of interval m is
        # lo of interval m+1): b0[m] = ge[m] - ge[m+1].  Only 2 compares live.
        prev = jnp.where(xr >= knots[0], 1.0, 0.0)
        b = []
        for m in range(1, P):
            cur = jnp.where(xr >= knots[m], 1.0, 0.0)
            b.append(prev - cur)
            prev = cur                                   # K+S indicators
        # recursion: in-place ascending m keeps the live set minimal; all
        # affine coefficients are compile-time Python-float immediates.
        for k in range(1, S + 1):
            for m in range(P - 1 - k):
                pa = 1.0 / (knots[m + k] - knots[m])
                qa = -knots[m] * pa
                pb = -1.0 / (knots[m + k + 1] - knots[m + 1])
                qb = -knots[m + k + 1] * pb
                b[m] = (xr * pa + qa) * b[m] + (xr * pb + qb) * b[m + 1]
            b = b[:P - 1 - k]
        # b[j], j = 0..K-1 are the order-S bases of every feature: (bb, In)

        # ---- base (SiLU) branch + spline branch on the MXU (f32 accum) ----
        silu = (xr * jax.nn.sigmoid(xr)).astype(mxu_dtype)
        y = jnp.dot(silu, bw_ref[...], preferred_element_type=f32)
        for j in range(K):
            y = y + jnp.dot(b[j].astype(mxu_dtype), sw_ref[j],
                            preferred_element_type=f32)

        if apply_softplus and layer == n_layers - 1:
            # numerically stable softplus
            y = jnp.maximum(y, 0.0) + jnp.log1p(jnp.exp(-jnp.abs(y)))
        x = y                                           # (bb, Out_pad), f32

    o_ref[...] = x.astype(o_ref.dtype)


def kan_forward_pallas(x, packed_layers, layer_dims, *, knots, spline_order,
                       apply_softplus, mxu_dtype):
    B, in0 = x.shape
    out_pad = layer_dims[-1][1]

    # Batch tiling: >=2 blocks when possible so the "parallel" axis can shard
    # across both TensorCores on v7x; multiples of 8 sublanes; <= 512 rows.
    if B <= 8:
        block_b = B
    else:
        block_b = min(512, max(8, _round_up(pl.cdiv(B, 2), 8)))
    grid = (pl.cdiv(B, block_b),)

    in_specs = [pl.BlockSpec((block_b, in0), lambda i: (i, 0))]
    flat_weights = []
    for (bw_t, sw_stack) in packed_layers:
        # Weights are grid-invariant (index_map -> block 0): one DMA, resident.
        # TODO(synk): pipeline_mode=pl.Buffered(1) to single-buffer them once
        #             plumbed through pallas_call; halves weight VMEM residency.
        in_specs.append(pl.BlockSpec(bw_t.shape, lambda i: (0, 0)))
        in_specs.append(pl.BlockSpec(sw_stack.shape, lambda i: (0, 0, 0)))
        flat_weights.extend((bw_t, sw_stack))
    out_specs = pl.BlockSpec((block_b, out_pad), lambda i: (i, 0))

    # Explicit scoped-VMEM budget from the real residency: 2x (double-buffered)
    # weights + pipelined I/O blocks + live f32 recursion temporaries + margin.
    K = len(knots) - 1 - spline_order
    max_in = max(d[0] for d in layer_dims)
    max_out = max(d[1] for d in layer_dims)
    wbytes = sum(int(np.prod(a.shape)) * a.dtype.itemsize for a in flat_weights)
    io_bytes = 2 * 2 * block_b * (in0 + out_pad) * 4
    tmp_bytes = ((len(knots) + K + 6) * block_b * max_in * 4
                 + 2 * block_b * max_out * 4)
    vmem_limit = int(min(112 * 2**20,
                         2 * wbytes + io_bytes + 2 * tmp_bytes + (16 << 20)))

    kernel = functools.partial(
        _kan_fused_kernel,
        layer_dims=tuple(layer_dims),
        knots=tuple(float(v) for v in knots),
        spline_order=spline_order,
        apply_softplus=apply_softplus,
        mxu_dtype=mxu_dtype)

    return pl.pallas_call(
        kernel,
        out_shape=jax.ShapeDtypeStruct((B, out_pad), x.dtype),
        grid=grid,
        in_specs=in_specs,
        out_specs=out_specs,
        compiler_params=pltpu.CompilerParams(
            dimension_semantics=("parallel",),
            vmem_limit_bytes=vmem_limit),
    )(x, *flat_weights)


# ----------------------------------------------------------------------------
# KAN model: host-side parameter construction + weight packing / padding.
# ----------------------------------------------------------------------------
class KANPallas:
    def __init__(self, layers_hidden, grid_size=5, spline_order=3,
                 grid_range=(-1.0, 1.0), modified_output=True,
                 mxu_dtype=jnp.bfloat16, key=None):
        self.grid_size = grid_size
        self.S = spline_order
        self.K = grid_size + spline_order
        self.modified_output = modified_output
        self.mxu_dtype = mxu_dtype
        self.out_features = layers_hidden[-1]

        h = (grid_range[1] - grid_range[0]) / grid_size
        # knots g[0..P-1], P = grid_size + 2*spline_order + 1
        self.knots = (np.arange(-spline_order, grid_size + spline_order + 1,
                                dtype=np.float64) * h + grid_range[0])

        if key is None:
            key = jax.random.PRNGKey(0)
        self.raw_layers = []     # (base_w (Out,In), scaled (Out,In,K)) for the reference
        self.packed_layers = []  # (bw_t, sw_stack) for the kernel (padded, mxu_dtype)
        self.layer_dims = []     # (in_real, out_pad) static metadata per layer
        for in_f, out_f in zip(layers_hidden, layers_hidden[1:]):
            key, k1, k2, k3 = jax.random.split(key, 4)
            # deterministic synthetic init (shapes match the PyTorch module;
            # kaiming-normal-like scales — not a checkpoint load)
            base_w = jax.random.normal(k1, (out_f, in_f), jnp.float32) * math.sqrt(2.0 / in_f)
            spline_w = jax.random.normal(k2, (out_f, in_f, self.K), jnp.float32) * 0.1
            spline_scaler = jax.random.normal(k3, (out_f, in_f), jnp.float32) * math.sqrt(2.0 / in_f)
            scaled = spline_w * spline_scaler[:, :, None]            # (Out, In, K)

            # Quantize weights once to the MXU operand dtype; the pure-JAX
            # reference uses the same (dequantized) weights, so any remaining
            # kernel/reference difference is in-kernel activation rounding only.
            base_w_q = base_w.astype(mxu_dtype)
            scaled_q = scaled.astype(mxu_dtype)
            self.raw_layers.append((base_w_q.astype(jnp.float32),
                                    scaled_q.astype(jnp.float32)))

            out_pad = _round_up(out_f, 128)       # lane-dense MXU N / writeback
            bw_t = jnp.zeros((in_f, out_pad), mxu_dtype)
            bw_t = bw_t.at[:, :out_f].set(jnp.transpose(base_w_q))
            # per-knot stack: sw_stack[j, i, o] = scaled[o, i, j]
            sw_stack = jnp.zeros((self.K, in_f, out_pad), mxu_dtype)
            sw_stack = sw_stack.at[:, :, :out_f].set(jnp.transpose(scaled_q, (2, 1, 0)))

            self.packed_layers.append((bw_t, sw_stack))
            self.layer_dims.append((in_f, out_pad))

    def __call__(self, x):
        y_pad = kan_forward_pallas(
            x, self.packed_layers, self.layer_dims,
            knots=self.knots, spline_order=self.S,
            apply_softplus=self.modified_output, mxu_dtype=self.mxu_dtype)
        return y_pad[:, :self.out_features]       # drop lane padding

    # pure-JAX reference (direct translation of the PyTorch forward)
    def reference(self, x):
        g = jnp.asarray(self.knots, jnp.float32)[None, None, :]
        n = len(self.raw_layers)
        for li, (base_w, scaled) in enumerate(self.raw_layers):
            base_out = (x * jax.nn.sigmoid(x)) @ base_w.T
            xe = x[:, :, None]
            bases = ((xe >= g[:, :, :-1]) & (xe < g[:, :, 1:])).astype(x.dtype)
            for k in range(1, self.S + 1):
                bases = ((xe - g[:, :, :-(k + 1)])
                         / (g[:, :, k:-1] - g[:, :, :-(k + 1)]) * bases[:, :, :-1]
                         + (g[:, :, k + 1:] - xe)
                         / (g[:, :, k + 1:] - g[:, :, 1:-k]) * bases[:, :, 1:])
            spline_out = jnp.einsum("bik,oik->bo", bases, scaled)
            x = base_out + spline_out
            if self.modified_output and li == n - 1:
                x = jnp.maximum(x, 0.0) + jnp.log1p(jnp.exp(-jnp.abs(x)))
        return x


if __name__ == "__main__":
    key = jax.random.PRNGKey(0)
    key, xk, pk = jax.random.split(key, 3)

    layers_hidden = [16, 32, 8]
    batch = 8
    x = jax.random.uniform(xk, (batch, layers_hidden[0]), jnp.float32,
                           minval=-1.0, maxval=1.0)

    # 1) exactness check: f32 MXU operands (bit-comparable path)
    model_f32 = KANPallas(layers_hidden, grid_size=5, spline_order=3,
                          modified_output=True, mxu_dtype=jnp.float32, key=pk)
    out_f32 = jax.block_until_ready(model_f32(x))
    ref_f32 = model_f32.reference(x)
    assert out_f32.shape == (batch, layers_hidden[-1])
    assert jnp.allclose(out_f32, ref_f32, atol=1e-4, rtol=1e-4), (
        float(jnp.max(jnp.abs(out_f32 - ref_f32))))

    # 2) production path per perf review: bf16 MXU operands, f32 accumulation
    model_bf16 = KANPallas(layers_hidden, grid_size=5, spline_order=3,
                           modified_output=True, mxu_dtype=jnp.bfloat16, key=pk)
    out_bf16 = jax.block_until_ready(model_bf16(x))
    ref_bf16 = model_bf16.reference(x)
    assert out_bf16.shape == (batch, layers_hidden[-1])
    rel_err = float(jnp.linalg.norm(out_bf16.astype(jnp.float32) - ref_bf16)
                    / (jnp.linalg.norm(ref_bf16) + 1e-12))
    assert rel_err < 3e-2, rel_err

    print("KERNEL_OK")
</pallas_src>

<mosaic_0001>
module attributes {stable_mosaic.version = 11 : i64} {
  func.func @_kan_fused_kernel(%arg0: i32, %arg1: memref<8x16xf32, #tpu.memory_space<vmem>>, %arg2: memref<16x128xf32, #tpu.memory_space<vmem>>, %arg3: memref<8x16x128xf32, #tpu.memory_space<vmem>>, %arg4: memref<32x128xf32, #tpu.memory_space<vmem>>, %arg5: memref<8x32x128xf32, #tpu.memory_space<vmem>>, %arg6: memref<8x128xf32, #tpu.memory_space<vmem>>) attributes {dimension_semantics = [#tpu.dimension_semantics<parallel>], iteration_bounds = array<i64: 1>, scalar_prefetch = 0 : i64, scratch_operands = 0 : i64, tpu.core_type = #tpu.core_type<tc>, window_params = [{transform_indices = @transform_0, window_bounds = array<i64: 8, 16>}, {pipeline_mode = #tpu.pipeline_mode<synchronous>, transform_indices = @transform_1, window_bounds = array<i64: 16, 128>}, {pipeline_mode = #tpu.pipeline_mode<synchronous>, transform_indices = @transform_2, window_bounds = array<i64: 8, 16, 128>}, {pipeline_mode = #tpu.pipeline_mode<synchronous>, transform_indices = @transform_3, window_bounds = array<i64: 32, 128>}, {pipeline_mode = #tpu.pipeline_mode<synchronous>, transform_indices = @transform_4, window_bounds = array<i64: 8, 32, 128>}, {transform_indices = @transform_5, window_bounds = array<i64: 8, 128>}]} {
    %c0 = arith.constant 0 : index
    %c0_0 = arith.constant 0 : index
    %0 = vector.load %arg1[%c0, %c0_0] : memref<8x16xf32, #tpu.memory_space<vmem>>, vector<8x16xf32>
    %cst = arith.constant -2.200000e+00 : f32
    %1 = vector.broadcast %cst : f32 to vector<8x16xf32>
    %2 = arith.cmpf oge, %0, %1 : vector<8x16xf32>
    %cst_1 = arith.constant 1.000000e+00 : f32
    %cst_2 = arith.constant 0.000000e+00 : f32
    %3 = vector.broadcast %cst_1 : f32 to vector<8x16xf32>
    %4 = vector.broadcast %cst_2 : f32 to vector<8x16xf32>
    %5 = arith.select %2, %3, %4 : vector<8x16xi1>, vector<8x16xf32>
    %cst_3 = arith.constant -1.800000e+00 : f32
    %6 = vector.broadcast %cst_3 : f32 to vector<8x16xf32>
    %7 = arith.cmpf oge, %0, %6 : vector<8x16xf32>
    %cst_4 = arith.constant 1.000000e+00 : f32
    %cst_5 = arith.constant 0.000000e+00 : f32
    %8 = vector.broadcast %cst_4 : f32 to vector<8x16xf32>
    %9 = vector.broadcast %cst_5 : f32 to vector<8x16xf32>
    %10 = arith.select %7, %8, %9 : vector<8x16xi1>, vector<8x16xf32>
    %11 = arith.subf %5, %10 : vector<8x16xf32>
    %cst_6 = arith.constant -1.400000e+00 : f32
    %12 = vector.broadcast %cst_6 : f32 to vector<8x16xf32>
    %13 = arith.cmpf oge, %0, %12 : vector<8x16xf32>
    %cst_7 = arith.constant 1.000000e+00 : f32
    %cst_8 = arith.constant 0.000000e+00 : f32
    %14 = vector.broadcast %cst_7 : f32 to vector<8x16xf32>
    %15 = vector.broadcast %cst_8 : f32 to vector<8x16xf32>
    %16 = arith.select %13, %14, %15 : vector<8x16xi1>, vector<8x16xf32>
    %17 = arith.subf %10, %16 : vector<8x16xf32>
    %cst_9 = arith.constant -1.000000e+00 : f32
    %18 = vector.broadcast %cst_9 : f32 to vector<8x16xf32>
    %19 = arith.cmpf oge, %0, %18 : vector<8x16xf32>
    %cst_10 = arith.constant 1.000000e+00 : f32
    %cst_11 = arith.constant 0.000000e+00 : f32
    %20 = vector.broadcast %cst_10 : f32 to vector<8x16xf32>
    %21 = vector.broadcast %cst_11 : f32 to vector<8x16xf32>
    %22 = arith.select %19, %20, %21 : vector<8x16xi1>, vector<8x16xf32>
    %23 = arith.subf %16, %22 : vector<8x16xf32>
    %cst_12 = arith.constant -6.000000e-01 : f32
    %24 = vector.broadcast %cst_12 : f32 to vector<8x16xf32>
    %25 = arith.cmpf oge, %0, %24 : vector<8x16xf32>
    %cst_13 = arith.constant 1.000000e+00 : f32
    %cst_14 = arith.constant 0.000000e+00 : f32
    %26 = vector.broadcast %cst_13 : f32 to vector<8x16xf32>
    %27 = vector.broadcast %cst_14 : f32 to vector<8x16xf32>
    %28 = arith.select %25, %26, %27 : vector<8x16xi1>, vector<8x16xf32>
    %29 = arith.subf %22, %28 : vector<8x16xf32>
    %cst_15 = arith.constant -2.000000e-01 : f32
    %30 = vector.broadcast %cst_15 : f32 to vector<8x16xf32>
    %31 = arith.cmpf oge, %0, %30 : vector<8x16xf32>
    %cst_16 = arith.constant 1.000000e+00 : f32
    %cst_17 = arith.constant 0.000000e+00 : f32
    %32 = vector.broadcast %cst_16 : f32 to vector<8x16xf32>
    %33 = vector.broadcast %cst_17 : f32 to vector<8x16xf32>
    %34 = arith.select %31, %32, %33 : vector<8x16xi1>, vector<8x16xf32>
    %35 = arith.subf %28, %34 : vector<8x16xf32>
    %cst_18 = arith.constant 2.000000e-01 : f32
    %36 = vector.broadcast %cst_18 : f32 to vector<8x16xf32>
    %37 = arith.cmpf oge, %0, %36 : vector<8x16xf32>
    %cst_19 = arith.constant 1.000000e+00 : f32
    %cst_20 = arith.constant 0.000000e+00 : f32
    %38 = vector.broadcast %cst_19 : f32 to vector<8x16xf32>
    %39 = vector.broadcast %cst_20 : f32 to vector<8x16xf32>
    %40 = arith.select %37, %38, %39 : vector<8x16xi1>, vector<8x16xf32>
    %41 = arith.subf %34, %40 : vector<8x16xf32>
    %cst_21 = arith.constant 6.000000e-01 : f32
    %42 = vector.broadcast %cst_21 : f32 to vector<8x16xf32>
    %43 = arith.cmpf oge, %0, %42 : vector<8x16xf32>
    %cst_22 = arith.constant 1.000000e+00 : f32
    %cst_23 = arith.constant 0.000000e+00 : f32
    %44 = vector.broadcast %cst_22 : f32 to vector<8x16xf32>
    %45 = vector.broadcast %cst_23 : f32 to vector<8x16xf32>
    %46 = arith.select %43, %44, %45 : vector<8x16xi1>, vector<8x16xf32>
    %47 = arith.subf %40, %46 : vector<8x16xf32>
    %cst_24 = arith.constant 1.000000e+00 : f32
    %48 = vector.broadcast %cst_24 : f32 to vector<8x16xf32>
    %49 = arith.cmpf oge, %0, %48 : vector<8x16xf32>
    %cst_25 = arith.constant 1.000000e+00 : f32
    %cst_26 = arith.constant 0.000000e+00 : f32
    %50 = vector.broadcast %cst_25 : f32 to vector<8x16xf32>
    %51 = vector.broadcast %cst_26 : f32 to vector<8x16xf32>
    %52 = arith.select %49, %50, %51 : vector<8x16xi1>, vector<8x16xf32>
    %53 = arith.subf %46, %52 : vector<8x16xf32>
    %cst_27 = arith.constant 1.400000e+00 : f32
    %54 = vector.broadcast %cst_27 : f32 to vector<8x16xf32>
    %55 = arith.cmpf oge, %0, %54 : vector<8x16xf32>
    %cst_28 = arith.constant 1.000000e+00 : f32
    %cst_29 = arith.constant 0.000000e+00 : f32
    %56 = vector.broadcast %cst_28 : f32 to vector<8x16xf32>
    %57 = vector.broadcast %cst_29 : f32 to vector<8x16xf32>
    %58 = arith.select %55, %56, %57 : vector<8x16xi1>, vector<8x16xf32>
    %59 = arith.subf %52, %58 : vector<8x16xf32>
    %cst_30 = arith.constant 1.800000e+00 : f32
    %60 = vector.broadcast %cst_30 : f32 to vector<8x16xf32>
    %61 = arith.cmpf oge, %0, %60 : vector<8x16xf32>
    %cst_31 = arith.constant 1.000000e+00 : f32
    %cst_32 = arith.constant 0.000000e+00 : f32
    %62 = vector.broadcast %cst_31 : f32 to vector<8x16xf32>
    %63 = vector.broadcast %cst_32 : f32 to vector<8x16xf32>
    %64 = arith.select %61, %62, %63 : vector<8x16xi1>, vector<8x16xf32>
    %65 = arith.subf %58, %64 : vector<8x16xf32>
    %cst_33 = arith.constant 2.200000e+00 : f32
    %66 = vector.broadcast %cst_33 : f32 to vector<8x16xf32>
    %67 = arith.cmpf oge, %0, %66 : vector<8x16xf32>
    %cst_34 = arith.constant 1.000000e+00 : f32
    %cst_35 = arith.constant 0.000000e+00 : f32
    %68 = vector.broadcast %cst_34 : f32 to vector<8x16xf32>
    %69 = vector.broadcast %cst_35 : f32 to vector<8x16xf32>
    %70 = arith.select %67, %68, %69 : vector<8x16xi1>, vector<8x16xf32>
    %71 = arith.subf %64, %70 : vector<8x16xf32>
    %cst_36 = arith.constant 2.500000e+00 : f32
    %72 = vector.broadcast %cst_36 : f32 to vector<8x16xf32>
    %73 = arith.mulf %0, %72 : vector<8x16xf32>
    %cst_37 = arith.constant 5.500000e+00 : f32
    %74 = vector.broadcast %cst_37 : f32 to vector<8x16xf32>
    %75 = arith.addf %73, %74 : vector<8x16xf32>
    %76 = arith.mulf %75, %11 : vector<8x16xf32>
    %cst_38 = arith.constant -2.500000e+00 : f32
    %77 = vector.broadcast %cst_38 : f32 to vector<8x16xf32>
    %78 = arith.mulf %0, %77 : vector<8x16xf32>
    %cst_39 = arith.constant -3.500000e+00 : f32
    %79 = vector.broadcast %cst_39 : f32 to vector<8x16xf32>
    %80 = arith.addf %78, %79 : vector<8x16xf32>
    %81 = arith.mulf %80, %17 : vector<8x16xf32>
    %82 = arith.addf %76, %81 : vector<8x16xf32>
    %cst_40 = arith.constant 2.500000e+00 : f32
    %83 = vector.broadcast %cst_40 : f32 to vector<8x16xf32>
    %84 = arith.mulf %0, %83 : vector<8x16xf32>
    %cst_41 = arith.constant 4.500000e+00 : f32
    %85 = vector.broadcast %cst_41 : f32 to vector<8x16xf32>
    %86 = arith.addf %84, %85 : vector<8x16xf32>
    %87 = arith.mulf %86, %17 : vector<8x16xf32>
    %cst_42 = arith.constant -2.500000e+00 : f32
    %88 = vector.broadcast %cst_42 : f32 to vector<8x16xf32>
    %89 = arith.mulf %0, %88 : vector<8x16xf32>
    %cst_43 = arith.constant -2.500000e+00 : f32
    %90 = vector.broadcast %cst_43 : f32 to vector<8x16xf32>
    %91 = arith.addf %89, %90 : vector<8x16xf32>
    %92 = arith.mulf %91, %23 : vector<8x16xf32>
    %93 = arith.addf %87, %92 : vector<8x16xf32>
    %cst_44 = arith.constant 2.500000e+00 : f32
    %94 = vector.broadcast %cst_44 : f32 to vector<8x16xf32>
    %95 = arith.mulf %0, %94 : vector<8x16xf32>
    %cst_45 = arith.constant 3.500000e+00 : f32
    %96 = vector.broadcast %cst_45 : f32 to vector<8x16xf32>
    %97 = arith.addf %95, %96 : vector<8x16xf32>
    %98 = arith.mulf %97, %23 : vector<8x16xf32>
    %cst_46 = arith.constant -2.500000e+00 : f32
    %99 = vector.broadcast %cst_46 : f32 to vector<8x16xf32>
    %100 = arith.mulf %0, %99 : vector<8x16xf32>
    %cst_47 = arith.constant -1.500000e+00 : f32
    %101 = vector.broadcast %cst_47 : f32 to vector<8x16xf32>
    %102 = arith.addf %100, %101 : vector<8x16xf32>
    %103 = arith.mulf %102, %29 : vector<8x16xf32>
    %104 = arith.addf %98, %103 : vector<8x16xf32>
    %cst_48 = arith.constant 2.500000e+00 : f32
    %105 = vector.broadcast %cst_48 : f32 to vector<8x16xf32>
    %106 = arith.mulf %0, %105 : vector<8x16xf32>
    %cst_49 = arith.constant 2.500000e+00 : f32
    %107 = vector.broadcast %cst_49 : f32 to vector<8x16xf32>
    %108 = arith.addf %106, %107 : vector<8x16xf32>
    %109 = arith.mulf %108, %29 : vector<8x16xf32>
    %cst_50 = arith.constant -2.500000e+00 : f32
    %110 = vector.broadcast %cst_50 : f32 to vector<8x16xf32>
    %111 = arith.mulf %0, %110 : vector<8x16xf32>
    %cst_51 = arith.constant -5.000000e-01 : f32
    %112 = vector.broadcast %cst_51 : f32 to vector<8x16xf32>
    %113 = arith.addf %111, %112 : vector<8x16xf32>
    %114 = arith.mulf %113, %35 : vector<8x16xf32>
    %115 = arith.addf %109, %114 : vector<8x16xf32>
    %cst_52 = arith.constant 2.500000e+00 : f32
    %116 = vector.broadcast %cst_52 : f32 to vector<8x16xf32>
    %117 = arith.mulf %0, %116 : vector<8x16xf32>
    %cst_53 = arith.constant 1.500000e+00 : f32
    %118 = vector.broadcast %cst_53 : f32 to vector<8x16xf32>
    %119 = arith.addf %117, %118 : vector<8x16xf32>
    %120 = arith.mulf %119, %35 : vector<8x16xf32>
    %cst_54 = arith.constant -2.500000e+00 : f32
    %121 = vector.broadcast %cst_54 : f32 to vector<8x16xf32>
    %122 = arith.mulf %0, %121 : vector<8x16xf32>
    %cst_55 = arith.constant 5.000000e-01 : f32
    %123 = vector.broadcast %cst_55 : f32 to vector<8x16xf32>
    %124 = arith.addf %122, %123 : vector<8x16xf32>
    %125 = arith.mulf %124, %41 : vector<8x16xf32>
    %126 = arith.addf %120, %125 : vector<8x16xf32>
    %cst_56 = arith.constant 2.500000e+00 : f32
    %127 = vector.broadcast %cst_56 : f32 to vector<8x16xf32>
    %128 = arith.mulf %0, %127 : vector<8x16xf32>
    %cst_57 = arith.constant 5.000000e-01 : f32
    %129 = vector.broadcast %cst_57 : f32 to vector<8x16xf32>
    %130 = arith.addf %128, %129 : vector<8x16xf32>
    %131 = arith.mulf %130, %41 : vector<8x16xf32>
    %cst_58 = arith.constant -2.500000e+00 : f32
    %132 = vector.broadcast %cst_58 : f32 to vector<8x16xf32>
    %133 = arith.mulf %0, %132 : vector<8x16xf32>
    %cst_59 = arith.constant 1.500000e+00 : f32
    %134 = vector.broadcast %cst_59 : f32 to vector<8x16xf32>
    %135 = arith.addf %133, %134 : vector<8x16xf32>
    %136 = arith.mulf %135, %47 : vector<8x16xf32>
    %137 = arith.addf %131, %136 : vector<8x16xf32>
    %cst_60 = arith.constant 2.500000e+00 : f32
    %138 = vector.broadcast %cst_60 : f32 to vector<8x16xf32>
    %139 = arith.mulf %0, %138 : vector<8x16xf32>
    %cst_61 = arith.constant -5.000000e-01 : f32
    %140 = vector.broadcast %cst_61 : f32 to vector<8x16xf32>
    %141 = arith.addf %139, %140 : vector<8x16xf32>
    %142 = arith.mulf %141, %47 : vector<8x16xf32>
    %cst_62 = arith.constant -2.500000e+00 : f32
    %143 = vector.broadcast %cst_62 : f32 to vector<8x16xf32>
    %144 = arith.mulf %0, %143 : vector<8x16xf32>
    %cst_63 = arith.constant 2.500000e+00 : f32
    %145 = vector.broadcast %cst_63 : f32 to vector<8x16xf32>
    %146 = arith.addf %144, %145 : vector<8x16xf32>
    %147 = arith.mulf %146, %53 : vector<8x16xf32>
    %148 = arith.addf %142, %147 : vector<8x16xf32>
    %cst_64 = arith.constant 2.500000e+00 : f32
    %149 = vector.broadcast %cst_64 : f32 to vector<8x16xf32>
    %150 = arith.mulf %0, %149 : vector<8x16xf32>
    %cst_65 = arith.constant -1.500000e+00 : f32
    %151 = vector.broadcast %cst_65 : f32 to vector<8x16xf32>
    %152 = arith.addf %150, %151 : vector<8x16xf32>
    %153 = arith.mulf %152, %53 : vector<8x16xf32>
    %cst_66 = arith.constant -2.500000e+00 : f32
    %154 = vector.broadcast %cst_66 : f32 to vector<8x16xf32>
    %155 = arith.mulf %0, %154 : vector<8x16xf32>
    %cst_67 = arith.constant 3.500000e+00 : f32
    %156 = vector.broadcast %cst_67 : f32 to vector<8x16xf32>
    %157 = arith.addf %155, %156 : vector<8x16xf32>
    %158 = arith.mulf %157, %59 : vector<8x16xf32>
    %159 = arith.addf %153, %158 : vector<8x16xf32>
    %cst_68 = arith.constant 2.500000e+00 : f32
    %160 = vector.broadcast %cst_68 : f32 to vector<8x16xf32>
    %161 = arith.mulf %0, %160 : vector<8x16xf32>
    %cst_69 = arith.constant -2.500000e+00 : f32
    %162 = vector.broadcast %cst_69 : f32 to vector<8x16xf32>
    %163 = arith.addf %161, %162 : vector<8x16xf32>
    %164 = arith.mulf %163, %59 : vector<8x16xf32>
    %cst_70 = arith.constant -2.500000e+00 : f32
    %165 = vector.broadcast %cst_70 : f32 to vector<8x16xf32>
    %166 = arith.mulf %0, %165 : vector<8x16xf32>
    %cst_71 = arith.constant 4.500000e+00 : f32
    %167 = vector.broadcast %cst_71 : f32 to vector<8x16xf32>
    %168 = arith.addf %166, %167 : vector<8x16xf32>
    %169 = arith.mulf %168, %65 : vector<8x16xf32>
    %170 = arith.addf %164, %169 : vector<8x16xf32>
    %cst_72 = arith.constant 2.500000e+00 : f32
    %171 = vector.broadcast %cst_72 : f32 to vector<8x16xf32>
    %172 = arith.mulf %0, %171 : vector<8x16xf32>
    %cst_73 = arith.constant -3.500000e+00 : f32
    %173 = vector.broadcast %cst_73 : f32 to vector<8x16xf32>
    %174 = arith.addf %172, %173 : vector<8x16xf32>
    %175 = arith.mulf %174, %65 : vector<8x16xf32>
    %cst_74 = arith.constant -2.500000e+00 : f32
    %176 = vector.broadcast %cst_74 : f32 to vector<8x16xf32>
    %177 = arith.mulf %0, %176 : vector<8x16xf32>
    %cst_75 = arith.constant 5.500000e+00 : f32
    %178 = vector.broadcast %cst_75 : f32 to vector<8x16xf32>
    %179 = arith.addf %177, %178 : vector<8x16xf32>
    %180 = arith.mulf %179, %71 : vector<8x16xf32>
    %181 = arith.addf %175, %180 : vector<8x16xf32>
    %cst_76 = arith.constant 1.250000e+00 : f32
    %182 = vector.broadcast %cst_76 : f32 to vector<8x16xf32>
    %183 = arith.mulf %0, %182 : vector<8x16xf32>
    %cst_77 = arith.constant 2.750000e+00 : f32
    %184 = vector.broadcast %cst_77 : f32 to vector<8x16xf32>
    %185 = arith.addf %183, %184 : vector<8x16xf32>
    %186 = arith.mulf %185, %82 : vector<8x16xf32>
    %cst_78 = arith.constant -1.250000e+00 : f32
    %187 = vector.broadcast %cst_78 : f32 to vector<8x16xf32>
    %188 = arith.mulf %0, %187 : vector<8x16xf32>
    %cst_79 = arith.constant -1.250000e+00 : f32
    %189 = vector.broadcast %cst_79 : f32 to vector<8x16xf32>
    %190 = arith.addf %188, %189 : vector<8x16xf32>
    %191 = arith.mulf %190, %93 : vector<8x16xf32>
    %192 = arith.addf %186, %191 : vector<8x16xf32>
    %cst_80 = arith.constant 1.250000e+00 : f32
    %193 = vector.broadcast %cst_80 : f32 to vector<8x16xf32>
    %194 = arith.mulf %0, %193 : vector<8x16xf32>
    %cst_81 = arith.constant 2.250000e+00 : f32
    %195 = vector.broadcast %cst_81 : f32 to vector<8x16xf32>
    %196 = arith.addf %194, %195 : vector<8x16xf32>
    %197 = arith.mulf %196, %93 : vector<8x16xf32>
    %cst_82 = arith.constant -1.250000e+00 : f32
    %198 = vector.broadcast %cst_82 : f32 to vector<8x16xf32>
    %199 = arith.mulf %0, %198 : vector<8x16xf32>
    %cst_83 = arith.constant -7.500000e-01 : f32
    %200 = vector.broadcast %cst_83 : f32 to vector<8x16xf32>
    %201 = arith.addf %199, %200 : vector<8x16xf32>
    %202 = arith.mulf %201, %104 : vector<8x16xf32>
    %203 = arith.addf %197, %202 : vector<8x16xf32>
    %cst_84 = arith.constant 1.250000e+00 : f32
    %204 = vector.broadcast %cst_84 : f32 to vector<8x16xf32>
    %205 = arith.mulf %0, %204 : vector<8x16xf32>
    %cst_85 = arith.constant 1.750000e+00 : f32
    %206 = vector.broadcast %cst_85 : f32 to vector<8x16xf32>
    %207 = arith.addf %205, %206 : vector<8x16xf32>
    %208 = arith.mulf %207, %104 : vector<8x16xf32>
    %cst_86 = arith.constant -1.250000e+00 : f32
    %209 = vector.broadcast %cst_86 : f32 to vector<8x16xf32>
    %210 = arith.mulf %0, %209 : vector<8x16xf32>
    %cst_87 = arith.constant -2.500000e-01 : f32
    %211 = vector.broadcast %cst_87 : f32 to vector<8x16xf32>
    %212 = arith.addf %210, %211 : vector<8x16xf32>
    %213 = arith.mulf %212, %115 : vector<8x16xf32>
    %214 = arith.addf %208, %213 : vector<8x16xf32>
    %cst_88 = arith.constant 1.250000e+00 : f32
    %215 = vector.broadcast %cst_88 : f32 to vector<8x16xf32>
    %216 = arith.mulf %0, %215 : vector<8x16xf32>
    %cst_89 = arith.constant 1.250000e+00 : f32
    %217 = vector.broadcast %cst_89 : f32 to vector<8x16xf32>
    %218 = arith.addf %216, %217 : vector<8x16xf32>
    %219 = arith.mulf %218, %115 : vector<8x16xf32>
    %cst_90 = arith.constant -1.250000e+00 : f32
    %220 = vector.broadcast %cst_90 : f32 to vector<8x16xf32>
    %221 = arith.mulf %0, %220 : vector<8x16xf32>
    %cst_91 = arith.constant 2.500000e-01 : f32
    %222 = vector.broadcast %cst_91 : f32 to vector<8x16xf32>
    %223 = arith.addf %221, %222 : vector<8x16xf32>
    %224 = arith.mulf %223, %126 : vector<8x16xf32>
    %225 = arith.addf %219, %224 : vector<8x16xf32>
    %cst_92 = arith.constant 1.250000e+00 : f32
    %226 = vector.broadcast %cst_92 : f32 to vector<8x16xf32>
    %227 = arith.mulf %0, %226 : vector<8x16xf32>
    %cst_93 = arith.constant 7.500000e-01 : f32
    %228 = vector.broadcast %cst_93 : f32 to vector<8x16xf32>
    %229 = arith.addf %227, %228 : vector<8x16xf32>
    %230 = arith.mulf %229, %126 : vector<8x16xf32>
    %cst_94 = arith.constant -1.250000e+00 : f32
    %231 = vector.broadcast %cst_94 : f32 to vector<8x16xf32>
    %232 = arith.mulf %0, %231 : vector<8x16xf32>
    %cst_95 = arith.constant 7.500000e-01 : f32
    %233 = vector.broadcast %cst_95 : f32 to vector<8x16xf32>
    %234 = arith.addf %232, %233 : vector<8x16xf32>
    %235 = arith.mulf %234, %137 : vector<8x16xf32>
    %236 = arith.addf %230, %235 : vector<8x16xf32>
    %cst_96 = arith.constant 1.250000e+00 : f32
    %237 = vector.broadcast %cst_96 : f32 to vector<8x16xf32>
    %238 = arith.mulf %0, %237 : vector<8x16xf32>
    %cst_97 = arith.constant 2.500000e-01 : f32
    %239 = vector.broadcast %cst_97 : f32 to vector<8x16xf32>
    %240 = arith.addf %238, %239 : vector<8x16xf32>
    %241 = arith.mulf %240, %137 : vector<8x16xf32>
    %cst_98 = arith.constant -1.250000e+00 : f32
    %242 = vector.broadcast %cst_98 : f32 to vector<8x16xf32>
    %243 = arith.mulf %0, %242 : vector<8x16xf32>
    %cst_99 = arith.constant 1.250000e+00 : f32
    %244 = vector.broadcast %cst_99 : f32 to vector<8x16xf32>
    %245 = arith.addf %243, %244 : vector<8x16xf32>
    %246 = arith.mulf %245, %148 : vector<8x16xf32>
    %247 = arith.addf %241, %246 : vector<8x16xf32>
    %cst_100 = arith.constant 1.250000e+00 : f32
    %248 = vector.broadcast %cst_100 : f32 to vector<8x16xf32>
    %249 = arith.mulf %0, %248 : vector<8x16xf32>
    %cst_101 = arith.constant -2.500000e-01 : f32
    %250 = vector.broadcast %cst_101 : f32 to vector<8x16xf32>
    %251 = arith.addf %249, %250 : vector<8x16xf32>
    %252 = arith.mulf %251, %148 : vector<8x16xf32>
    %cst_102 = arith.constant -1.250000e+00 : f32
    %253 = vector.broadcast %cst_102 : f32 to vector<8x16xf32>
    %254 = arith.mulf %0, %253 : vector<8x16xf32>
    %cst_103 = arith.constant 1.750000e+00 : f32
    %255 = vector.broadcast %cst_103 : f32 to vector<8x16xf32>
    %256 = arith.addf %254, %255 : vector<8x16xf32>
    %257 = arith.mulf %256, %159 : vector<8x16xf32>
    %258 = arith.addf %252, %257 : vector<8x16xf32>
    %cst_104 = arith.constant 1.250000e+00 : f32
    %259 = vector.broadcast %cst_104 : f32 to vector<8x16xf32>
    %260 = arith.mulf %0, %259 : vector<8x16xf32>
    %cst_105 = arith.constant -7.500000e-01 : f32
    %261 = vector.broadcast %cst_105 : f32 to vector<8x16xf32>
    %262 = arith.addf %260, %261 : vector<8x16xf32>
    %263 = arith.mulf %262, %159 : vector<8x16xf32>
    %cst_106 = arith.constant -1.250000e+00 : f32
    %264 = vector.broadcast %cst_106 : f32 to vector<8x16xf32>
    %265 = arith.mulf %0, %264 : vector<8x16xf32>
    %cst_107 = arith.constant 2.250000e+00 : f32
    %266 = vector.broadcast %cst_107 : f32 to vector<8x16xf32>
    %267 = arith.addf %265, %266 : vector<8x16xf32>
    %268 = arith.mulf %267, %170 : vector<8x16xf32>
    %269 = arith.addf %263, %268 : vector<8x16xf32>
    %cst_108 = arith.constant 1.250000e+00 : f32
    %270 = vector.broadcast %cst_108 : f32 to vector<8x16xf32>
    %271 = arith.mulf %0, %270 : vector<8x16xf32>
    %cst_109 = arith.constant -1.250000e+00 : f32
    %272 = vector.broadcast %cst_109 : f32 to vector<8x16xf32>
    %273 = arith.addf %271, %272 : vector<8x16xf32>
    %274 = arith.mulf %273, %170 : vector<8x16xf32>
    %cst_110 = arith.constant -1.250000e+00 : f32
    %275 = vector.broadcast %cst_110 : f32 to vector<8x16xf32>
    %276 = arith.mulf %0, %275 : vector<8x16xf32>
    %cst_111 = arith.constant 2.750000e+00 : f32
    %277 = vector.broadcast %cst_111 : f32 to vector<8x16xf32>
    %278 = arith.addf %276, %277 : vector<8x16xf32>
    %279 = arith.mulf %278, %181 : vector<8x16xf32>
    %280 = arith.addf %274, %279 : vector<8x16xf32>
    %cst_112 = arith.constant 0.833333313 : f32
    %281 = vector.broadcast %cst_112 : f32 to vector<8x16xf32>
    %282 = arith.mulf %0, %281 : vector<8x16xf32>
    %cst_113 = arith.constant 1.83333337 : f32
    %283 = vector.broadcast %cst_113 : f32 to vector<8x16xf32>
    %284 = arith.addf %282, %283 : vector<8x16xf32>
    %285 = arith.mulf %284, %192 : vector<8x16xf32>
    %cst_114 = arith.constant -0.833333313 : f32
    %286 = vector.broadcast %cst_114 : f32 to vector<8x16xf32>
    %287 = arith.mulf %0, %286 : vector<8x16xf32>
    %cst_115 = arith.constant -5.000000e-01 : f32
    %288 = vector.broadcast %cst_115 : f32 to vector<8x16xf32>
    %289 = arith.addf %287, %288 : vector<8x16xf32>
    %290 = arith.mulf %289, %203 : vector<8x16xf32>
    %291 = arith.addf %285, %290 : vector<8x16xf32>
    %cst_116 = arith.constant 0.833333313 : f32
    %292 = vector.broadcast %cst_116 : f32 to vector<8x16xf32>
    %293 = arith.mulf %0, %292 : vector<8x16xf32>
    %cst_117 = arith.constant 1.500000e+00 : f32
    %294 = vector.broadcast %cst_117 : f32 to vector<8x16xf32>
    %295 = arith.addf %293, %294 : vector<8x16xf32>
    %296 = arith.mulf %295, %203 : vector<8x16xf32>
    %cst_118 = arith.constant -0.833333313 : f32
    %297 = vector.broadcast %cst_118 : f32 to vector<8x16xf32>
    %298 = arith.mulf %0, %297 : vector<8x16xf32>
    %cst_119 = arith.constant -0.166666672 : f32
    %299 = vector.broadcast %cst_119 : f32 to vector<8x16xf32>
    %300 = arith.addf %298, %299 : vector<8x16xf32>
    %301 = arith.mulf %300, %214 : vector<8x16xf32>
    %302 = arith.addf %296, %301 : vector<8x16xf32>
    %cst_120 = arith.constant 0.833333313 : f32
    %303 = vector.broadcast %cst_120 : f32 to vector<8x16xf32>
    %304 = arith.mulf %0, %303 : vector<8x16xf32>
    %cst_121 = arith.constant 1.16666663 : f32
    %305 = vector.broadcast %cst_121 : f32 to vector<8x16xf32>
    %306 = arith.addf %304, %305 : vector<8x16xf32>
    %307 = arith.mulf %306, %214 : vector<8x16xf32>
    %cst_122 = arith.constant -0.833333313 : f32
    %308 = vector.broadcast %cst_122 : f32 to vector<8x16xf32>
    %309 = arith.mulf %0, %308 : vector<8x16xf32>
    %cst_123 = arith.constant 0.166666672 : f32
    %310 = vector.broadcast %cst_123 : f32 to vector<8x16xf32>
    %311 = arith.addf %309, %310 : vector<8x16xf32>
    %312 = arith.mulf %311, %225 : vector<8x16xf32>
    %313 = arith.addf %307, %312 : vector<8x16xf32>
    %cst_124 = arith.constant 0.833333313 : f32
    %314 = vector.broadcast %cst_124 : f32 to vector<8x16xf32>
    %315 = arith.mulf %0, %314 : vector<8x16xf32>
    %cst_125 = arith.constant 0.833333313 : f32
    %316 = vector.broadcast %cst_125 : f32 to vector<8x16xf32>
    %317 = arith.addf %315, %316 : vector<8x16xf32>
    %318 = arith.mulf %317, %225 : vector<8x16xf32>
    %cst_126 = arith.constant -0.833333313 : f32
    %319 = vector.broadcast %cst_126 : f32 to vector<8x16xf32>
    %320 = arith.mulf %0, %319 : vector<8x16xf32>
    %cst_127 = arith.constant 5.000000e-01 : f32
    %321 = vector.broadcast %cst_127 : f32 to vector<8x16xf32>
    %322 = arith.addf %320, %321 : vector<8x16xf32>
    %323 = arith.mulf %322, %236 : vector<8x16xf32>
    %324 = arith.addf %318, %323 : vector<8x16xf32>
    %cst_128 = arith.constant 0.833333313 : f32
    %325 = vector.broadcast %cst_128 : f32 to vector<8x16xf32>
    %326 = arith.mulf %0, %325 : vector<8x16xf32>
    %cst_129 = arith.constant 5.000000e-01 : f32
    %327 = vector.broadcast %cst_129 : f32 to vector<8x16xf32>
    %328 = arith.addf %326, %327 : vector<8x16xf32>
    %329 = arith.mulf %328, %236 : vector<8x16xf32>
    %cst_130 = arith.constant -0.833333313 : f32
    %330 = vector.broadcast %cst_130 : f32 to vector<8x16xf32>
    %331 = arith.mulf %0, %330 : vector<8x16xf32>
    %cst_131 = arith.constant 0.833333313 : f32
    %332 = vector.broadcast %cst_131 : f32 to vector<8x16xf32>
    %333 = arith.addf %331, %332 : vector<8x16xf32>
    %334 = arith.mulf %333, %247 : vector<8x16xf32>
    %335 = arith.addf %329, %334 : vector<8x16xf32>
    %cst_132 = arith.constant 0.833333313 : f32
    %336 = vector.broadcast %cst_132 : f32 to vector<8x16xf32>
    %337 = arith.mulf %0, %336 : vector<8x16xf32>
    %cst_133 = arith.constant 0.166666672 : f32
    %338 = vector.broadcast %cst_133 : f32 to vector<8x16xf32>
    %339 = arith.addf %337, %338 : vector<8x16xf32>
    %340 = arith.mulf %339, %247 : vector<8x16xf32>
    %cst_134 = arith.constant -0.833333313 : f32
    %341 = vector.broadcast %cst_134 : f32 to vector<8x16xf32>
    %342 = arith.mulf %0, %341 : vector<8x16xf32>
    %cst_135 = arith.constant 1.16666663 : f32
    %343 = vector.broadcast %cst_135 : f32 to vector<8x16xf32>
    %344 = arith.addf %342, %343 : vector<8x16xf32>
    %345 = arith.mulf %344, %258 : vector<8x16xf32>
    %346 = arith.addf %340, %345 : vector<8x16xf32>
    %cst_136 = arith.constant 0.833333313 : f32
    %347 = vector.broadcast %cst_136 : f32 to vector<8x16xf32>
    %348 = arith.mulf %0, %347 : vector<8x16xf32>
    %cst_137 = arith.constant -0.166666672 : f32
    %349 = vector.broadcast %cst_137 : f32 to vector<8x16xf32>
    %350 = arith.addf %348, %349 : vector<8x16xf32>
    %351 = arith.mulf %350, %258 : vector<8x16xf32>
    %cst_138 = arith.constant -0.833333313 : f32
    %352 = vector.broadcast %cst_138 : f32 to vector<8x16xf32>
    %353 = arith.mulf %0, %352 : vector<8x16xf32>
    %cst_139 = arith.constant 1.500000e+00 : f32
    %354 = vector.broadcast %cst_139 : f32 to vector<8x16xf32>
    %355 = arith.addf %353, %354 : vector<8x16xf32>
    %356 = arith.mulf %355, %269 : vector<8x16xf32>
    %357 = arith.addf %351, %356 : vector<8x16xf32>
    %cst_140 = arith.constant 0.833333313 : f32
    %358 = vector.broadcast %cst_140 : f32 to vector<8x16xf32>
    %359 = arith.mulf %0, %358 : vector<8x16xf32>
    %cst_141 = arith.constant -5.000000e-01 : f32
    %360 = vector.broadcast %cst_141 : f32 to vector<8x16xf32>
    %361 = arith.addf %359, %360 : vector<8x16xf32>
    %362 = arith.mulf %361, %269 : vector<8x16xf32>
    %cst_142 = arith.constant -0.833333313 : f32
    %363 = vector.broadcast %cst_142 : f32 to vector<8x16xf32>
    %364 = arith.mulf %0, %363 : vector<8x16xf32>
    %cst_143 = arith.constant 1.83333337 : f32
    %365 = vector.broadcast %cst_143 : f32 to vector<8x16xf32>
    %366 = arith.addf %364, %365 : vector<8x16xf32>
    %367 = arith.mulf %366, %280 : vector<8x16xf32>
    %368 = arith.addf %362, %367 : vector<8x16xf32>
    %369 = arith.negf %0 : vector<8x16xf32>
    %370 = math.exp %369 : vector<8x16xf32>
    %cst_144 = arith.constant 1.000000e+00 : f32
    %371 = vector.broadcast %cst_144 : f32 to vector<8x16xf32>
    %372 = arith.addf %371, %370 : vector<8x16xf32>
    %373 = arith.divf %371, %372 : vector<8x16xf32>
    %374 = arith.mulf %0, %373 : vector<8x16xf32>
    %c0_145 = arith.constant 0 : index
    %c0_146 = arith.constant 0 : index
    %375 = vector.load %arg2[%c0_145, %c0_146] : memref<16x128xf32, #tpu.memory_space<vmem>>, vector<16x128xf32>
    %cst_147 = arith.constant dense<0.000000e+00> : vector<8x128xf32>
    %376 = tpu.matmul %374, %375, %cst_147 {dimension_numbers = #tpu.dot_dimension_numbers<[1], [0], [0], [1], [0, 0, 1, 1], [], []>} : vector<8x16xf32>, vector<16x128xf32>, vector<8x128xf32> -> vector<8x128xf32>
    %c0_148 = arith.constant 0 : index
    %c0_149 = arith.constant 0 : index
    %c0_150 = arith.constant 0 : index
    %377 = vector.load %arg3[%c0_148, %c0_149, %c0_150] : memref<8x16x128xf32, #tpu.memory_space<vmem>>, vector<1x16x128xf32>
    %378 = vector.shape_cast %377 : vector<1x16x128xf32> to vector<16x128xf32>
    %cst_151 = arith.constant dense<0.000000e+00> : vector<8x128xf32>
    %379 = tpu.matmul %291, %378, %cst_151 {dimension_numbers = #tpu.dot_dimension_numbers<[1], [0], [0], [1], [0, 0, 1, 1], [], []>} : vector<8x16xf32>, vector<16x128xf32>, vector<8x128xf32> -> vector<8x128xf32>
    %380 = arith.addf %376, %379 : vector<8x128xf32>
    %c1 = arith.constant 1 : index
    %c0_152 = arith.constant 0 : index
    %c0_153 = arith.constant 0 : index
    %381 = vector.load %arg3[%c1, %c0_152, %c0_153] : memref<8x16x128xf32, #tpu.memory_space<vmem>>, vector<1x16x128xf32>
    %382 = vector.shape_cast %381 : vector<1x16x128xf32> to vector<16x128xf32>
    %cst_154 = arith.constant dense<0.000000e+00> : vector<8x128xf32>
    %383 = tpu.matmul %302, %382, %cst_154 {dimension_numbers = #tpu.dot_dimension_numbers<[1], [0], [0], [1], [0, 0, 1, 1], [], []>} : vector<8x16xf32>, vector<16x128xf32>, vector<8x128xf32> -> vector<8x128xf32>
    %384 = arith.addf %380, %383 : vector<8x128xf32>
    %c2 = arith.constant 2 : index
    %c0_155 = arith.constant 0 : index
    %c0_156 = arith.constant 0 : index
    %385 = vector.load %arg3[%c2, %c0_155, %c0_156] : memref<8x16x128xf32, #tpu.memory_space<vmem>>, vector<1x16x128xf32>
    %386 = vector.shape_cast %385 : vector<1x16x128xf32> to vector<16x128xf32>
    %cst_157 = arith.constant dense<0.000000e+00> : vector<8x128xf32>
    %387 = tpu.matmul %313, %386, %cst_157 {dimension_numbers = #tpu.dot_dimension_numbers<[1], [0], [0], [1], [0, 0, 1, 1], [], []>} : vector<8x16xf32>, vector<16x128xf32>, vector<8x128xf32> -> vector<8x128xf32>
    %388 = arith.addf %384, %387 : vector<8x128xf32>
    %c3 = arith.constant 3 : index
    %c0_158 = arith.constant 0 : index
    %c0_159 = arith.constant 0 : index
    %389 = vector.load %arg3[%c3, %c0_158, %c0_159] : memref<8x16x128xf32, #tpu.memory_space<vmem>>, vector<1x16x128xf32>
    %390 = vector.shape_cast %389 : vector<1x16x128xf32> to vector<16x128xf32>
    %cst_160 = arith.constant dense<0.000000e+00> : vector<8x128xf32>
    %391 = tpu.matmul %324, %390, %cst_160 {dimension_numbers = #tpu.dot_dimension_numbers<[1], [0], [0], [1], [0, 0, 1, 1], [], []>} : vector<8x16xf32>, vector<16x128xf32>, vector<8x128xf32> -> vector<8x128xf32>
    %392 = arith.addf %388, %391 : vector<8x128xf32>
    %c4 = arith.constant 4 : index
    %c0_161 = arith.constant 0 : index
    %c0_162 = arith.constant 0 : index
    %393 = vector.load %arg3[%c4, %c0_161, %c0_162] : memref<8x16x128xf32, #tpu.memory_space<vmem>>, vector<1x16x128xf32>
    %394 = vector.shape_cast %393 : vector<1x16x128xf32> to vector<16x128xf32>
    %cst_163 = arith.constant dense<0.000000e+00> : vector<8x128xf32>
    %395 = tpu.matmul %335, %394, %cst_163 {dimension_numbers = #tpu.dot_dimension_numbers<[1], [0], [0], [1], [0, 0, 1, 1], [], []>} : vector<8x16xf32>, vector<16x128xf32>, vector<8x128xf32> -> vector<8x128xf32>
    %396 = arith.addf %392, %395 : vector<8x128xf32>
    %c5 = arith.constant 5 : index
    %c0_164 = arith.constant 0 : index
    %c0_165 = arith.constant 0 : index
    %397 = vector.load %arg3[%c5, %c0_164, %c0_165] : memref<8x16x128xf32, #tpu.memory_space<vmem>>, vector<1x16x128xf32>
    %398 = vector.shape_cast %397 : vector<1x16x128xf32> to vector<16x128xf32>
    %cst_166 = arith.constant dense<0.000000e+00> : vector<8x128xf32>
    %399 = tpu.matmul %346, %398, %cst_166 {dimension_numbers = #tpu.dot_dimension_numbers<[1], [0], [0], [1], [0, 0, 1, 1], [], []>} : vector<8x16xf32>, vector<16x128xf32>, vector<8x128xf32> -> vector<8x128xf32>
    %400 = arith.addf %396, %399 : vector<8x128xf32>
    %c6 = arith.constant 6 : index
    %c0_167 = arith.constant 0 : index
    %c0_168 = arith.constant 0 : index
    %401 = vector.load %arg3[%c6, %c0_167, %c0_168] : memref<8x16x128xf32, #tpu.memory_space<vmem>>, vector<1x16x128xf32>
    %402 = vector.shape_cast %401 : vector<1x16x128xf32> to vector<16x128xf32>
    %cst_169 = arith.constant dense<0.000000e+00> : vector<8x128xf32>
    %403 = tpu.matmul %357, %402, %cst_169 {dimension_numbers = #tpu.dot_dimension_numbers<[1], [0], [0], [1], [0, 0, 1, 1], [], []>} : vector<8x16xf32>, vector<16x128xf32>, vector<8x128xf32> -> vector<8x128xf32>
    %404 = arith.addf %400, %403 : vector<8x128xf32>
    %c7 = arith.constant 7 : index
    %c0_170 = arith.constant 0 : index
    %c0_171 = arith.constant 0 : index
    %405 = vector.load %arg3[%c7, %c0_170, %c0_171] : memref<8x16x128xf32, #tpu.memory_space<vmem>>, vector<1x16x128xf32>
    %406 = vector.shape_cast %405 : vector<1x16x128xf32> to vector<16x128xf32>
    %cst_172 = arith.constant dense<0.000000e+00> : vector<8x128xf32>
    %407 = tpu.matmul %368, %406, %cst_172 {dimension_numbers = #tpu.dot_dimension_numbers<[1], [0], [0], [1], [0, 0, 1, 1], [], []>} : vector<8x16xf32>, vector<16x128xf32>, vector<8x128xf32> -> vector<8x128xf32>
    %408 = arith.addf %404, %407 : vector<8x128xf32>
    %409 = vector.extract_strided_slice %408 {offsets = [0, 0], sizes = [8, 32], strides = [1, 1]} : vector<8x128xf32> to vector<8x32xf32>
    %cst_173 = arith.constant -2.200000e+00 : f32
    %410 = vector.broadcast %cst_173 : f32 to vector<8x32xf32>
    %411 = arith.cmpf oge, %409, %410 : vector<8x32xf32>
    %cst_174 = arith.constant 1.000000e+00 : f32
    %cst_175 = arith.constant 0.000000e+00 : f32
    %412 = vector.broadcast %cst_174 : f32 to vector<8x32xf32>
    %413 = vector.broadcast %cst_175 : f32 to vector<8x32xf32>
    %414 = arith.select %411, %412, %413 : vector<8x32xi1>, vector<8x32xf32>
    %cst_176 = arith.constant -1.800000e+00 : f32
    %415 = vector.broadcast %cst_176 : f32 to vector<8x32xf32>
    %416 = arith.cmpf oge, %409, %415 : vector<8x32xf32>
    %cst_177 = arith.constant 1.000000e+00 : f32
    %cst_178 = arith.constant 0.000000e+00 : f32
    %417 = vector.broadcast %cst_177 : f32 to vector<8x32xf32>
    %418 = vector.broadcast %cst_178 : f32 to vector<8x32xf32>
    %419 = arith.select %416, %417, %418 : vector<8x32xi1>, vector<8x32xf32>
    %420 = arith.subf %414, %419 : vector<8x32xf32>
    %cst_179 = arith.constant -1.400000e+00 : f32
    %421 = vector.broadcast %cst_179 : f32 to vector<8x32xf32>
    %422 = arith.cmpf oge, %409, %421 : vector<8x32xf32>
    %cst_180 = arith.constant 1.000000e+00 : f32
    %cst_181 = arith.constant 0.000000e+00 : f32
    %423 = vector.broadcast %cst_180 : f32 to vector<8x32xf32>
    %424 = vector.broadcast %cst_181 : f32 to vector<8x32xf32>
    %425 = arith.select %422, %423, %424 : vector<8x32xi1>, vector<8x32xf32>
    %426 = arith.subf %419, %425 : vector<8x32xf32>
    %cst_182 = arith.constant -1.000000e+00 : f32
    %427 = vector.broadcast %cst_182 : f32 to vector<8x32xf32>
    %428 = arith.cmpf oge, %409, %427 : vector<8x32xf32>
    %cst_183 = arith.constant 1.000000e+00 : f32
    %cst_184 = arith.constant 0.000000e+00 : f32
    %429 = vector.broadcast %cst_183 : f32 to vector<8x32xf32>
    %430 = vector.broadcast %cst_184 : f32 to vector<8x32xf32>
    %431 = arith.select %428, %429, %430 : vector<8x32xi1>, vector<8x32xf32>
    %432 = arith.subf %425, %431 : vector<8x32xf32>
    %cst_185 = arith.constant -6.000000e-01 : f32
    %433 = vector.broadcast %cst_185 : f32 to vector<8x32xf32>
    %434 = arith.cmpf oge, %409, %433 : vector<8x32xf32>
    %cst_186 = arith.constant 1.000000e+00 : f32
    %cst_187 = arith.constant 0.000000e+00 : f32
    %435 = vector.broadcast %cst_186 : f32 to vector<8x32xf32>
    %436 = vector.broadcast %cst_187 : f32 to vector<8x32xf32>
    %437 = arith.select %434, %435, %436 : vector<8x32xi1>, vector<8x32xf32>
    %438 = arith.subf %431, %437 : vector<8x32xf32>
    %cst_188 = arith.constant -2.000000e-01 : f32
    %439 = vector.broadcast %cst_188 : f32 to vector<8x32xf32>
    %440 = arith.cmpf oge, %409, %439 : vector<8x32xf32>
    %cst_189 = arith.constant 1.000000e+00 : f32
    %cst_190 = arith.constant 0.000000e+00 : f32
    %441 = vector.broadcast %cst_189 : f32 to vector<8x32xf32>
    %442 = vector.broadcast %cst_190 : f32 to vector<8x32xf32>
    %443 = arith.select %440, %441, %442 : vector<8x32xi1>, vector<8x32xf32>
    %444 = arith.subf %437, %443 : vector<8x32xf32>
    %cst_191 = arith.constant 2.000000e-01 : f32
    %445 = vector.broadcast %cst_191 : f32 to vector<8x32xf32>
    %446 = arith.cmpf oge, %409, %445 : vector<8x32xf32>
    %cst_192 = arith.constant 1.000000e+00 : f32
    %cst_193 = arith.constant 0.000000e+00 : f32
    %447 = vector.broadcast %cst_192 : f32 to vector<8x32xf32>
    %448 = vector.broadcast %cst_193 : f32 to vector<8x32xf32>
    %449 = arith.select %446, %447, %448 : vector<8x32xi1>, vector<8x32xf32>
    %450 = arith.subf %443, %449 : vector<8x32xf32>
    %cst_194 = arith.constant 6.000000e-01 : f32
    %451 = vector.broadcast %cst_194 : f32 to vector<8x32xf32>
    %452 = arith.cmpf oge, %409, %451 : vector<8x32xf32>
    %cst_195 = arith.constant 1.000000e+00 : f32
    %cst_196 = arith.constant 0.000000e+00 : f32
    %453 = vector.broadcast %cst_195 : f32 to vector<8x32xf32>
    %454 = vector.broadcast %cst_196 : f32 to vector<8x32xf32>
    %455 = arith.select %452, %453, %454 : vector<8x32xi1>, vector<8x32xf32>
    %456 = arith.subf %449, %455 : vector<8x32xf32>
    %cst_197 = arith.constant 1.000000e+00 : f32
    %457 = vector.broadcast %cst_197 : f32 to vector<8x32xf32>
    %458 = arith.cmpf oge, %409, %457 : vector<8x32xf32>
    %cst_198 = arith.constant 1.000000e+00 : f32
    %cst_199 = arith.constant 0.000000e+00 : f32
    %459 = vector.broadcast %cst_198 : f32 to vector<8x32xf32>
    %460 = vector.broadcast %cst_199 : f32 to vector<8x32xf32>
    %461 = arith.select %458, %459, %460 : vector<8x32xi1>, vector<8x32xf32>
    %462 = arith.subf %455, %461 : vector<8x32xf32>
    %cst_200 = arith.constant 1.400000e+00 : f32
    %463 = vector.broadcast %cst_200 : f32 to vector<8x32xf32>
    %464 = arith.cmpf oge, %409, %463 : vector<8x32xf32>
    %cst_201 = arith.constant 1.000000e+00 : f32
    %cst_202 = arith.constant 0.000000e+00 : f32
    %465 = vector.broadcast %cst_201 : f32 to vector<8x32xf32>
    %466 = vector.broadcast %cst_202 : f32 to vector<8x32xf32>
    %467 = arith.select %464, %465, %466 : vector<8x32xi1>, vector<8x32xf32>
    %468 = arith.subf %461, %467 : vector<8x32xf32>
    %cst_203 = arith.constant 1.800000e+00 : f32
    %469 = vector.broadcast %cst_203 : f32 to vector<8x32xf32>
    %470 = arith.cmpf oge, %409, %469 : vector<8x32xf32>
    %cst_204 = arith.constant 1.000000e+00 : f32
    %cst_205 = arith.constant 0.000000e+00 : f32
    %471 = vector.broadcast %cst_204 : f32 to vector<8x32xf32>
    %472 = vector.broadcast %cst_205 : f32 to vector<8x32xf32>
    %473 = arith.select %470, %471, %472 : vector<8x32xi1>, vector<8x32xf32>
    %474 = arith.subf %467, %473 : vector<8x32xf32>
    %cst_206 = arith.constant 2.200000e+00 : f32
    %475 = vector.broadcast %cst_206 : f32 to vector<8x32xf32>
    %476 = arith.cmpf oge, %409, %475 : vector<8x32xf32>
    %cst_207 = arith.constant 1.000000e+00 : f32
    %cst_208 = arith.constant 0.000000e+00 : f32
    %477 = vector.broadcast %cst_207 : f32 to vector<8x32xf32>
    %478 = vector.broadcast %cst_208 : f32 to vector<8x32xf32>
    %479 = arith.select %476, %477, %478 : vector<8x32xi1>, vector<8x32xf32>
    %480 = arith.subf %473, %479 : vector<8x32xf32>
    %cst_209 = arith.constant 2.500000e+00 : f32
    %481 = vector.broadcast %cst_209 : f32 to vector<8x32xf32>
    %482 = arith.mulf %409, %481 : vector<8x32xf32>
    %cst_210 = arith.constant 5.500000e+00 : f32
    %483 = vector.broadcast %cst_210 : f32 to vector<8x32xf32>
    %484 = arith.addf %482, %483 : vector<8x32xf32>
    %485 = arith.mulf %484, %420 : vector<8x32xf32>
    %cst_211 = arith.constant -2.500000e+00 : f32
    %486 = vector.broadcast %cst_211 : f32 to vector<8x32xf32>
    %487 = arith.mulf %409, %486 : vector<8x32xf32>
    %cst_212 = arith.constant -3.500000e+00 : f32
    %488 = vector.broadcast %cst_212 : f32 to vector<8x32xf32>
    %489 = arith.addf %487, %488 : vector<8x32xf32>
    %490 = arith.mulf %489, %426 : vector<8x32xf32>
    %491 = arith.addf %485, %490 : vector<8x32xf32>
    %cst_213 = arith.constant 2.500000e+00 : f32
    %492 = vector.broadcast %cst_213 : f32 to vector<8x32xf32>
    %493 = arith.mulf %409, %492 : vector<8x32xf32>
    %cst_214 = arith.constant 4.500000e+00 : f32
    %494 = vector.broadcast %cst_214 : f32 to vector<8x32xf32>
    %495 = arith.addf %493, %494 : vector<8x32xf32>
    %496 = arith.mulf %495, %426 : vector<8x32xf32>
    %cst_215 = arith.constant -2.500000e+00 : f32
    %497 = vector.broadcast %cst_215 : f32 to vector<8x32xf32>
    %498 = arith.mulf %409, %497 : vector<8x32xf32>
    %cst_216 = arith.constant -2.500000e+00 : f32
    %499 = vector.broadcast %cst_216 : f32 to vector<8x32xf32>
    %500 = arith.addf %498, %499 : vector<8x32xf32>
    %501 = arith.mulf %500, %432 : vector<8x32xf32>
    %502 = arith.addf %496, %501 : vector<8x32xf32>
    %cst_217 = arith.constant 2.500000e+00 : f32
    %503 = vector.broadcast %cst_217 : f32 to vector<8x32xf32>
    %504 = arith.mulf %409, %503 : vector<8x32xf32>
    %cst_218 = arith.constant 3.500000e+00 : f32
    %505 = vector.broadcast %cst_218 : f32 to vector<8x32xf32>
    %506 = arith.addf %504, %505 : vector<8x32xf32>
    %507 = arith.mulf %506, %432 : vector<8x32xf32>
    %cst_219 = arith.constant -2.500000e+00 : f32
    %508 = vector.broadcast %cst_219 : f32 to vector<8x32xf32>
    %509 = arith.mulf %409, %508 : vector<8x32xf32>
    %cst_220 = arith.constant -1.500000e+00 : f32
    %510 = vector.broadcast %cst_220 : f32 to vector<8x32xf32>
    %511 = arith.addf %509, %510 : vector<8x32xf32>
    %512 = arith.mulf %511, %438 : vector<8x32xf32>
    %513 = arith.addf %507, %512 : vector<8x32xf32>
    %cst_221 = arith.constant 2.500000e+00 : f32
    %514 = vector.broadcast %cst_221 : f32 to vector<8x32xf32>
    %515 = arith.mulf %409, %514 : vector<8x32xf32>
    %cst_222 = arith.constant 2.500000e+00 : f32
    %516 = vector.broadcast %cst_222 : f32 to vector<8x32xf32>
    %517 = arith.addf %515, %516 : vector<8x32xf32>
    %518 = arith.mulf %517, %438 : vector<8x32xf32>
    %cst_223 = arith.constant -2.500000e+00 : f32
    %519 = vector.broadcast %cst_223 : f32 to vector<8x32xf32>
    %520 = arith.mulf %409, %519 : vector<8x32xf32>
    %cst_224 = arith.constant -5.000000e-01 : f32
    %521 = vector.broadcast %cst_224 : f32 to vector<8x32xf32>
    %522 = arith.addf %520, %521 : vector<8x32xf32>
    %523 = arith.mulf %522, %444 : vector<8x32xf32>
    %524 = arith.addf %518, %523 : vector<8x32xf32>
    %cst_225 = arith.constant 2.500000e+00 : f32
    %525 = vector.broadcast %cst_225 : f32 to vector<8x32xf32>
    %526 = arith.mulf %409, %525 : vector<8x32xf32>
    %cst_226 = arith.constant 1.500000e+00 : f32
    %527 = vector.broadcast %cst_226 : f32 to vector<8x32xf32>
    %528 = arith.addf %526, %527 : vector<8x32xf32>
    %529 = arith.mulf %528, %444 : vector<8x32xf32>
    %cst_227 = arith.constant -2.500000e+00 : f32
    %530 = vector.broadcast %cst_227 : f32 to vector<8x32xf32>
    %531 = arith.mulf %409, %530 : vector<8x32xf32>
    %cst_228 = arith.constant 5.000000e-01 : f32
    %532 = vector.broadcast %cst_228 : f32 to vector<8x32xf32>
    %533 = arith.addf %531, %532 : vector<8x32xf32>
    %534 = arith.mulf %533, %450 : vector<8x32xf32>
    %535 = arith.addf %529, %534 : vector<8x32xf32>
    %cst_229 = arith.constant 2.500000e+00 : f32
    %536 = vector.broadcast %cst_229 : f32 to vector<8x32xf32>
    %537 = arith.mulf %409, %536 : vector<8x32xf32>
    %cst_230 = arith.constant 5.000000e-01 : f32
    %538 = vector.broadcast %cst_230 : f32 to vector<8x32xf32>
    %539 = arith.addf %537, %538 : vector<8x32xf32>
    %540 = arith.mulf %539, %450 : vector<8x32xf32>
    %cst_231 = arith.constant -2.500000e+00 : f32
    %541 = vector.broadcast %cst_231 : f32 to vector<8x32xf32>
    %542 = arith.mulf %409, %541 : vector<8x32xf32>
    %cst_232 = arith.constant 1.500000e+00 : f32
    %543 = vector.broadcast %cst_232 : f32 to vector<8x32xf32>
    %544 = arith.addf %542, %543 : vector<8x32xf32>
    %545 = arith.mulf %544, %456 : vector<8x32xf32>
    %546 = arith.addf %540, %545 : vector<8x32xf32>
    %cst_233 = arith.constant 2.500000e+00 : f32
    %547 = vector.broadcast %cst_233 : f32 to vector<8x32xf32>
    %548 = arith.mulf %409, %547 : vector<8x32xf32>
    %cst_234 = arith.constant -5.000000e-01 : f32
    %549 = vector.broadcast %cst_234 : f32 to vector<8x32xf32>
    %550 = arith.addf %548, %549 : vector<8x32xf32>
    %551 = arith.mulf %550, %456 : vector<8x32xf32>
    %cst_235 = arith.constant -2.500000e+00 : f32
    %552 = vector.broadcast %cst_235 : f32 to vector<8x32xf32>
    %553 = arith.mulf %409, %552 : vector<8x32xf32>
    %cst_236 = arith.constant 2.500000e+00 : f32
    %554 = vector.broadcast %cst_236 : f32 to vector<8x32xf32>
    %555 = arith.addf %553, %554 : vector<8x32xf32>
    %556 = arith.mulf %555, %462 : vector<8x32xf32>
    %557 = arith.addf %551, %556 : vector<8x32xf32>
    %cst_237 = arith.constant 2.500000e+00 : f32
    %558 = vector.broadcast %cst_237 : f32 to vector<8x32xf32>
    %559 = arith.mulf %409, %558 : vector<8x32xf32>
    %cst_238 = arith.constant -1.500000e+00 : f32
    %560 = vector.broadcast %cst_238 : f32 to vector<8x32xf32>
    %561 = arith.addf %559, %560 : vector<8x32xf32>
    %562 = arith.mulf %561, %462 : vector<8x32xf32>
    %cst_239 = arith.constant -2.500000e+00 : f32
    %563 = vector.broadcast %cst_239 : f32 to vector<8x32xf32>
    %564 = arith.mulf %409, %563 : vector<8x32xf32>
    %cst_240 = arith.constant 3.500000e+00 : f32
    %565 = vector.broadcast %cst_240 : f32 to vector<8x32xf32>
    %566 = arith.addf %564, %565 : vector<8x32xf32>
    %567 = arith.mulf %566, %468 : vector<8x32xf32>
    %568 = arith.addf %562, %567 : vector<8x32xf32>
    %cst_241 = arith.constant 2.500000e+00 : f32
    %569 = vector.broadcast %cst_241 : f32 to vector<8x32xf32>
    %570 = arith.mulf %409, %569 : vector<8x32xf32>
    %cst_242 = arith.constant -2.500000e+00 : f32
    %571 = vector.broadcast %cst_242 : f32 to vector<8x32xf32>
    %572 = arith.addf %570, %571 : vector<8x32xf32>
    %573 = arith.mulf %572, %468 : vector<8x32xf32>
    %cst_243 = arith.constant -2.500000e+00 : f32
    %574 = vector.broadcast %cst_243 : f32 to vector<8x32xf32>
    %575 = arith.mulf %409, %574 : vector<8x32xf32>
    %cst_244 = arith.constant 4.500000e+00 : f32
    %576 = vector.broadcast %cst_244 : f32 to vector<8x32xf32>
    %577 = arith.addf %575, %576 : vector<8x32xf32>
    %578 = arith.mulf %577, %474 : vector<8x32xf32>
    %579 = arith.addf %573, %578 : vector<8x32xf32>
    %cst_245 = arith.constant 2.500000e+00 : f32
    %580 = vector.broadcast %cst_245 : f32 to vector<8x32xf32>
    %581 = arith.mulf %409, %580 : vector<8x32xf32>
    %cst_246 = arith.constant -3.500000e+00 : f32
    %582 = vector.broadcast %cst_246 : f32 to vector<8x32xf32>
    %583 = arith.addf %581, %582 : vector<8x32xf32>
    %584 = arith.mulf %583, %474 : vector<8x32xf32>
    %cst_247 = arith.constant -2.500000e+00 : f32
    %585 = vector.broadcast %cst_247 : f32 to vector<8x32xf32>
    %586 = arith.mulf %409, %585 : vector<8x32xf32>
    %cst_248 = arith.constant 5.500000e+00 : f32
    %587 = vector.broadcast %cst_248 : f32 to vector<8x32xf32>
    %588 = arith.addf %586, %587 : vector<8x32xf32>
    %589 = arith.mulf %588, %480 : vector<8x32xf32>
    %590 = arith.addf %584, %589 : vector<8x32xf32>
    %cst_249 = arith.constant 1.250000e+00 : f32
    %591 = vector.broadcast %cst_249 : f32 to vector<8x32xf32>
    %592 = arith.mulf %409, %591 : vector<8x32xf32>
    %cst_250 = arith.constant 2.750000e+00 : f32
    %593 = vector.broadcast %cst_250 : f32 to vector<8x32xf32>
    %594 = arith.addf %592, %593 : vector<8x32xf32>
    %595 = arith.mulf %594, %491 : vector<8x32xf32>
    %cst_251 = arith.constant -1.250000e+00 : f32
    %596 = vector.broadcast %cst_251 : f32 to vector<8x32xf32>
    %597 = arith.mulf %409, %596 : vector<8x32xf32>
    %cst_252 = arith.constant -1.250000e+00 : f32
    %598 = vector.broadcast %cst_252 : f32 to vector<8x32xf32>
    %599 = arith.addf %597, %598 : vector<8x32xf32>
    %600 = arith.mulf %599, %502 : vector<8x32xf32>
    %601 = arith.addf %595, %600 : vector<8x32xf32>
    %cst_253 = arith.constant 1.250000e+00 : f32
    %602 = vector.broadcast %cst_253 : f32 to vector<8x32xf32>
    %603 = arith.mulf %409, %602 : vector<8x32xf32>
    %cst_254 = arith.constant 2.250000e+00 : f32
    %604 = vector.broadcast %cst_254 : f32 to vector<8x32xf32>
    %605 = arith.addf %603, %604 : vector<8x32xf32>
    %606 = arith.mulf %605, %502 : vector<8x32xf32>
    %cst_255 = arith.constant -1.250000e+00 : f32
    %607 = vector.broadcast %cst_255 : f32 to vector<8x32xf32>
    %608 = arith.mulf %409, %607 : vector<8x32xf32>
    %cst_256 = arith.constant -7.500000e-01 : f32
    %609 = vector.broadcast %cst_256 : f32 to vector<8x32xf32>
    %610 = arith.addf %608, %609 : vector<8x32xf32>
    %611 = arith.mulf %610, %513 : vector<8x32xf32>
    %612 = arith.addf %606, %611 : vector<8x32xf32>
    %cst_257 = arith.constant 1.250000e+00 : f32
    %613 = vector.broadcast %cst_257 : f32 to vector<8x32xf32>
    %614 = arith.mulf %409, %613 : vector<8x32xf32>
    %cst_258 = arith.constant 1.750000e+00 : f32
    %615 = vector.broadcast %cst_258 : f32 to vector<8x32xf32>
    %616 = arith.addf %614, %615 : vector<8x32xf32>
    %617 = arith.mulf %616, %513 : vector<8x32xf32>
    %cst_259 = arith.constant -1.250000e+00 : f32
    %618 = vector.broadcast %cst_259 : f32 to vector<8x32xf32>
    %619 = arith.mulf %409, %618 : vector<8x32xf32>
    %cst_260 = arith.constant -2.500000e-01 : f32
    %620 = vector.broadcast %cst_260 : f32 to vector<8x32xf32>
    %621 = arith.addf %619, %620 : vector<8x32xf32>
    %622 = arith.mulf %621, %524 : vector<8x32xf32>
    %623 = arith.addf %617, %622 : vector<8x32xf32>
    %cst_261 = arith.constant 1.250000e+00 : f32
    %624 = vector.broadcast %cst_261 : f32 to vector<8x32xf32>
    %625 = arith.mulf %409, %624 : vector<8x32xf32>
    %cst_262 = arith.constant 1.250000e+00 : f32
    %626 = vector.broadcast %cst_262 : f32 to vector<8x32xf32>
    %627 = arith.addf %625, %626 : vector<8x32xf32>
    %628 = arith.mulf %627, %524 : vector<8x32xf32>
    %cst_263 = arith.constant -1.250000e+00 : f32
    %629 = vector.broadcast %cst_263 : f32 to vector<8x32xf32>
    %630 = arith.mulf %409, %629 : vector<8x32xf32>
    %cst_264 = arith.constant 2.500000e-01 : f32
    %631 = vector.broadcast %cst_264 : f32 to vector<8x32xf32>
    %632 = arith.addf %630, %631 : vector<8x32xf32>
    %633 = arith.mulf %632, %535 : vector<8x32xf32>
    %634 = arith.addf %628, %633 : vector<8x32xf32>
    %cst_265 = arith.constant 1.250000e+00 : f32
    %635 = vector.broadcast %cst_265 : f32 to vector<8x32xf32>
    %636 = arith.mulf %409, %635 : vector<8x32xf32>
    %cst_266 = arith.constant 7.500000e-01 : f32
    %637 = vector.broadcast %cst_266 : f32 to vector<8x32xf32>
    %638 = arith.addf %636, %637 : vector<8x32xf32>
    %639 = arith.mulf %638, %535 : vector<8x32xf32>
    %cst_267 = arith.constant -1.250000e+00 : f32
    %640 = vector.broadcast %cst_267 : f32 to vector<8x32xf32>
    %641 = arith.mulf %409, %640 : vector<8x32xf32>
    %cst_268 = arith.constant 7.500000e-01 : f32
    %642 = vector.broadcast %cst_268 : f32 to vector<8x32xf32>
    %643 = arith.addf %641, %642 : vector<8x32xf32>
    %644 = arith.mulf %643, %546 : vector<8x32xf32>
    %645 = arith.addf %639, %644 : vector<8x32xf32>
    %cst_269 = arith.constant 1.250000e+00 : f32
    %646 = vector.broadcast %cst_269 : f32 to vector<8x32xf32>
    %647 = arith.mulf %409, %646 : vector<8x32xf32>
    %cst_270 = arith.constant 2.500000e-01 : f32
    %648 = vector.broadcast %cst_270 : f32 to vector<8x32xf32>
    %649 = arith.addf %647, %648 : vector<8x32xf32>
    %650 = arith.mulf %649, %546 : vector<8x32xf32>
    %cst_271 = arith.constant -1.250000e+00 : f32
    %651 = vector.broadcast %cst_271 : f32 to vector<8x32xf32>
    %652 = arith.mulf %409, %651 : vector<8x32xf32>
    %cst_272 = arith.constant 1.250000e+00 : f32
    %653 = vector.broadcast %cst_272 : f32 to vector<8x32xf32>
    %654 = arith.addf %652, %653 : vector<8x32xf32>
    %655 = arith.mulf %654, %557 : vector<8x32xf32>
    %656 = arith.addf %650, %655 : vector<8x32xf32>
    %cst_273 = arith.constant 1.250000e+00 : f32
    %657 = vector.broadcast %cst_273 : f32 to vector<8x32xf32>
    %658 = arith.mulf %409, %657 : vector<8x32xf32>
    %cst_274 = arith.constant -2.500000e-01 : f32
    %659 = vector.broadcast %cst_274 : f32 to vector<8x32xf32>
    %660 = arith.addf %658, %659 : vector<8x32xf32>
    %661 = arith.mulf %660, %557 : vector<8x32xf32>
    %cst_275 = arith.constant -1.250000e+00 : f32
    %662 = vector.broadcast %cst_275 : f32 to vector<8x32xf32>
    %663 = arith.mulf %409, %662 : vector<8x32xf32>
    %cst_276 = arith.constant 1.750000e+00 : f32
    %664 = vector.broadcast %cst_276 : f32 to vector<8x32xf32>
    %665 = arith.addf %663, %664 : vector<8x32xf32>
    %666 = arith.mulf %665, %568 : vector<8x32xf32>
    %667 = arith.addf %661, %666 : vector<8x32xf32>
    %cst_277 = arith.constant 1.250000e+00 : f32
    %668 = vector.broadcast %cst_277 : f32 to vector<8x32xf32>
    %669 = arith.mulf %409, %668 : vector<8x32xf32>
    %cst_278 = arith.constant -7.500000e-01 : f32
    %670 = vector.broadcast %cst_278 : f32 to vector<8x32xf32>
    %671 = arith.addf %669, %670 : vector<8x32xf32>
    %672 = arith.mulf %671, %568 : vector<8x32xf32>
    %cst_279 = arith.constant -1.250000e+00 : f32
    %673 = vector.broadcast %cst_279 : f32 to vector<8x32xf32>
    %674 = arith.mulf %409, %673 : vector<8x32xf32>
    %cst_280 = arith.constant 2.250000e+00 : f32
    %675 = vector.broadcast %cst_280 : f32 to vector<8x32xf32>
    %676 = arith.addf %674, %675 : vector<8x32xf32>
    %677 = arith.mulf %676, %579 : vector<8x32xf32>
    %678 = arith.addf %672, %677 : vector<8x32xf32>
    %cst_281 = arith.constant 1.250000e+00 : f32
    %679 = vector.broadcast %cst_281 : f32 to vector<8x32xf32>
    %680 = arith.mulf %409, %679 : vector<8x32xf32>
    %cst_282 = arith.constant -1.250000e+00 : f32
    %681 = vector.broadcast %cst_282 : f32 to vector<8x32xf32>
    %682 = arith.addf %680, %681 : vector<8x32xf32>
    %683 = arith.mulf %682, %579 : vector<8x32xf32>
    %cst_283 = arith.constant -1.250000e+00 : f32
    %684 = vector.broadcast %cst_283 : f32 to vector<8x32xf32>
    %685 = arith.mulf %409, %684 : vector<8x32xf32>
    %cst_284 = arith.constant 2.750000e+00 : f32
    %686 = vector.broadcast %cst_284 : f32 to vector<8x32xf32>
    %687 = arith.addf %685, %686 : vector<8x32xf32>
    %688 = arith.mulf %687, %590 : vector<8x32xf32>
    %689 = arith.addf %683, %688 : vector<8x32xf32>
    %cst_285 = arith.constant 0.833333313 : f32
    %690 = vector.broadcast %cst_285 : f32 to vector<8x32xf32>
    %691 = arith.mulf %409, %690 : vector<8x32xf32>
    %cst_286 = arith.constant 1.83333337 : f32
    %692 = vector.broadcast %cst_286 : f32 to vector<8x32xf32>
    %693 = arith.addf %691, %692 : vector<8x32xf32>
    %694 = arith.mulf %693, %601 : vector<8x32xf32>
    %cst_287 = arith.constant -0.833333313 : f32
    %695 = vector.broadcast %cst_287 : f32 to vector<8x32xf32>
    %696 = arith.mulf %409, %695 : vector<8x32xf32>
    %cst_288 = arith.constant -5.000000e-01 : f32
    %697 = vector.broadcast %cst_288 : f32 to vector<8x32xf32>
    %698 = arith.addf %696, %697 : vector<8x32xf32>
    %699 = arith.mulf %698, %612 : vector<8x32xf32>
    %700 = arith.addf %694, %699 : vector<8x32xf32>
    %cst_289 = arith.constant 0.833333313 : f32
    %701 = vector.broadcast %cst_289 : f32 to vector<8x32xf32>
    %702 = arith.mulf %409, %701 : vector<8x32xf32>
    %cst_290 = arith.constant 1.500000e+00 : f32
    %703 = vector.broadcast %cst_290 : f32 to vector<8x32xf32>
    %704 = arith.addf %702, %703 : vector<8x32xf32>
    %705 = arith.mulf %704, %612 : vector<8x32xf32>
    %cst_291 = arith.constant -0.833333313 : f32
    %706 = vector.broadcast %cst_291 : f32 to vector<8x32xf32>
    %707 = arith.mulf %409, %706 : vector<8x32xf32>
    %cst_292 = arith.constant -0.166666672 : f32
    %708 = vector.broadcast %cst_292 : f32 to vector<8x32xf32>
    %709 = arith.addf %707, %708 : vector<8x32xf32>
    %710 = arith.mulf %709, %623 : vector<8x32xf32>
    %711 = arith.addf %705, %710 : vector<8x32xf32>
    %cst_293 = arith.constant 0.833333313 : f32
    %712 = vector.broadcast %cst_293 : f32 to vector<8x32xf32>
    %713 = arith.mulf %409, %712 : vector<8x32xf32>
    %cst_294 = arith.constant 1.16666663 : f32
    %714 = vector.broadcast %cst_294 : f32 to vector<8x32xf32>
    %715 = arith.addf %713, %714 : vector<8x32xf32>
    %716 = arith.mulf %715, %623 : vector<8x32xf32>
    %cst_295 = arith.constant -0.833333313 : f32
    %717 = vector.broadcast %cst_295 : f32 to vector<8x32xf32>
    %718 = arith.mulf %409, %717 : vector<8x32xf32>
    %cst_296 = arith.constant 0.166666672 : f32
    %719 = vector.broadcast %cst_296 : f32 to vector<8x32xf32>
    %720 = arith.addf %718, %719 : vector<8x32xf32>
    %721 = arith.mulf %720, %634 : vector<8x32xf32>
    %722 = arith.addf %716, %721 : vector<8x32xf32>
    %cst_297 = arith.constant 0.833333313 : f32
    %723 = vector.broadcast %cst_297 : f32 to vector<8x32xf32>
    %724 = arith.mulf %409, %723 : vector<8x32xf32>
    %cst_298 = arith.constant 0.833333313 : f32
    %725 = vector.broadcast %cst_298 : f32 to vector<8x32xf32>
    %726 = arith.addf %724, %725 : vector<8x32xf32>
    %727 = arith.mulf %726, %634 : vector<8x32xf32>
    %cst_299 = arith.constant -0.833333313 : f32
    %728 = vector.broadcast %cst_299 : f32 to vector<8x32xf32>
    %729 = arith.mulf %409, %728 : vector<8x32xf32>
    %cst_300 = arith.constant 5.000000e-01 : f32
    %730 = vector.broadcast %cst_300 : f32 to vector<8x32xf32>
    %731 = arith.addf %729, %730 : vector<8x32xf32>
    %732 = arith.mulf %731, %645 : vector<8x32xf32>
    %733 = arith.addf %727, %732 : vector<8x32xf32>
    %cst_301 = arith.constant 0.833333313 : f32
    %734 = vector.broadcast %cst_301 : f32 to vector<8x32xf32>
    %735 = arith.mulf %409, %734 : vector<8x32xf32>
    %cst_302 = arith.constant 5.000000e-01 : f32
    %736 = vector.broadcast %cst_302 : f32 to vector<8x32xf32>
    %737 = arith.addf %735, %736 : vector<8x32xf32>
    %738 = arith.mulf %737, %645 : vector<8x32xf32>
    %cst_303 = arith.constant -0.833333313 : f32
    %739 = vector.broadcast %cst_303 : f32 to vector<8x32xf32>
    %740 = arith.mulf %409, %739 : vector<8x32xf32>
    %cst_304 = arith.constant 0.833333313 : f32
    %741 = vector.broadcast %cst_304 : f32 to vector<8x32xf32>
    %742 = arith.addf %740, %741 : vector<8x32xf32>
    %743 = arith.mulf %742, %656 : vector<8x32xf32>
    %744 = arith.addf %738, %743 : vector<8x32xf32>
    %cst_305 = arith.constant 0.833333313 : f32
    %745 = vector.broadcast %cst_305 : f32 to vector<8x32xf32>
    %746 = arith.mulf %409, %745 : vector<8x32xf32>
    %cst_306 = arith.constant 0.166666672 : f32
    %747 = vector.broadcast %cst_306 : f32 to vector<8x32xf32>
    %748 = arith.addf %746, %747 : vector<8x32xf32>
    %749 = arith.mulf %748, %656 : vector<8x32xf32>
    %cst_307 = arith.constant -0.833333313 : f32
    %750 = vector.broadcast %cst_307 : f32 to vector<8x32xf32>
    %751 = arith.mulf %409, %750 : vector<8x32xf32>
    %cst_308 = arith.constant 1.16666663 : f32
    %752 = vector.broadcast %cst_308 : f32 to vector<8x32xf32>
    %753 = arith.addf %751, %752 : vector<8x32xf32>
    %754 = arith.mulf %753, %667 : vector<8x32xf32>
    %755 = arith.addf %749, %754 : vector<8x32xf32>
    %cst_309 = arith.constant 0.833333313 : f32
    %756 = vector.broadcast %cst_309 : f32 to vector<8x32xf32>
    %757 = arith.mulf %409, %756 : vector<8x32xf32>
    %cst_310 = arith.constant -0.166666672 : f32
    %758 = vector.broadcast %cst_310 : f32 to vector<8x32xf32>
    %759 = arith.addf %757, %758 : vector<8x32xf32>
    %760 = arith.mulf %759, %667 : vector<8x32xf32>
    %cst_311 = arith.constant -0.833333313 : f32
    %761 = vector.broadcast %cst_311 : f32 to vector<8x32xf32>
    %762 = arith.mulf %409, %761 : vector<8x32xf32>
    %cst_312 = arith.constant 1.500000e+00 : f32
    %763 = vector.broadcast %cst_312 : f32 to vector<8x32xf32>
    %764 = arith.addf %762, %763 : vector<8x32xf32>
    %765 = arith.mulf %764, %678 : vector<8x32xf32>
    %766 = arith.addf %760, %765 : vector<8x32xf32>
    %cst_313 = arith.constant 0.833333313 : f32
    %767 = vector.broadcast %cst_313 : f32 to vector<8x32xf32>
    %768 = arith.mulf %409, %767 : vector<8x32xf32>
    %cst_314 = arith.constant -5.000000e-01 : f32
    %769 = vector.broadcast %cst_314 : f32 to vector<8x32xf32>
    %770 = arith.addf %768, %769 : vector<8x32xf32>
    %771 = arith.mulf %770, %678 : vector<8x32xf32>
    %cst_315 = arith.constant -0.833333313 : f32
    %772 = vector.broadcast %cst_315 : f32 to vector<8x32xf32>
    %773 = arith.mulf %409, %772 : vector<8x32xf32>
    %cst_316 = arith.constant 1.83333337 : f32
    %774 = vector.broadcast %cst_316 : f32 to vector<8x32xf32>
    %775 = arith.addf %773, %774 : vector<8x32xf32>
    %776 = arith.mulf %775, %689 : vector<8x32xf32>
    %777 = arith.addf %771, %776 : vector<8x32xf32>
    %778 = arith.negf %409 : vector<8x32xf32>
    %779 = math.exp %778 : vector<8x32xf32>
    %cst_317 = arith.constant 1.000000e+00 : f32
    %780 = vector.broadcast %cst_317 : f32 to vector<8x32xf32>
    %781 = arith.addf %780, %779 : vector<8x32xf32>
    %782 = arith.divf %780, %781 : vector<8x32xf32>
    %783 = arith.mulf %409, %782 : vector<8x32xf32>
    %c0_318 = arith.constant 0 : index
    %c0_319 = arith.constant 0 : index
    %784 = vector.load %arg4[%c0_318, %c0_319] : memref<32x128xf32, #tpu.memory_space<vmem>>, vector<32x128xf32>
    %cst_320 = arith.constant dense<0.000000e+00> : vector<8x128xf32>
    %785 = tpu.matmul %783, %784, %cst_320 {dimension_numbers = #tpu.dot_dimension_numbers<[1], [0], [0], [1], [0, 0, 1, 1], [], []>} : vector<8x32xf32>, vector<32x128xf32>, vector<8x128xf32> -> vector<8x128xf32>
    %c0_321 = arith.constant 0 : index
    %c0_322 = arith.constant 0 : index
    %c0_323 = arith.constant 0 : index
    %786 = vector.load %arg5[%c0_321, %c0_322, %c0_323] : memref<8x32x128xf32, #tpu.memory_space<vmem>>, vector<1x32x128xf32>
    %787 = vector.shape_cast %786 : vector<1x32x128xf32> to vector<32x128xf32>
    %cst_324 = arith.constant dense<0.000000e+00> : vector<8x128xf32>
    %788 = tpu.matmul %700, %787, %cst_324 {dimension_numbers = #tpu.dot_dimension_numbers<[1], [0], [0], [1], [0, 0, 1, 1], [], []>} : vector<8x32xf32>, vector<32x128xf32>, vector<8x128xf32> -> vector<8x128xf32>
    %789 = arith.addf %785, %788 : vector<8x128xf32>
    %c1_325 = arith.constant 1 : index
    %c0_326 = arith.constant 0 : index
    %c0_327 = arith.constant 0 : index
    %790 = vector.load %arg5[%c1_325, %c0_326, %c0_327] : memref<8x32x128xf32, #tpu.memory_space<vmem>>, vector<1x32x128xf32>
    %791 = vector.shape_cast %790 : vector<1x32x128xf32> to vector<32x128xf32>
    %cst_328 = arith.constant dense<0.000000e+00> : vector<8x128xf32>
    %792 = tpu.matmul %711, %791, %cst_328 {dimension_numbers = #tpu.dot_dimension_numbers<[1], [0], [0], [1], [0, 0, 1, 1], [], []>} : vector<8x32xf32>, vector<32x128xf32>, vector<8x128xf32> -> vector<8x128xf32>
    %793 = arith.addf %789, %792 : vector<8x128xf32>
    %c2_329 = arith.constant 2 : index
    %c0_330 = arith.constant 0 : index
    %c0_331 = arith.constant 0 : index
    %794 = vector.load %arg5[%c2_329, %c0_330, %c0_331] : memref<8x32x128xf32, #tpu.memory_space<vmem>>, vector<1x32x128xf32>
    %795 = vector.shape_cast %794 : vector<1x32x128xf32> to vector<32x128xf32>
    %cst_332 = arith.constant dense<0.000000e+00> : vector<8x128xf32>
    %796 = tpu.matmul %722, %795, %cst_332 {dimension_numbers = #tpu.dot_dimension_numbers<[1], [0], [0], [1], [0, 0, 1, 1], [], []>} : vector<8x32xf32>, vector<32x128xf32>, vector<8x128xf32> -> vector<8x128xf32>
    %797 = arith.addf %793, %796 : vector<8x128xf32>
    %c3_333 = arith.constant 3 : index
    %c0_334 = arith.constant 0 : index
    %c0_335 = arith.constant 0 : index
    %798 = vector.load %arg5[%c3_333, %c0_334, %c0_335] : memref<8x32x128xf32, #tpu.memory_space<vmem>>, vector<1x32x128xf32>
    %799 = vector.shape_cast %798 : vector<1x32x128xf32> to vector<32x128xf32>
    %cst_336 = arith.constant dense<0.000000e+00> : vector<8x128xf32>
    %800 = tpu.matmul %733, %799, %cst_336 {dimension_numbers = #tpu.dot_dimension_numbers<[1], [0], [0], [1], [0, 0, 1, 1], [], []>} : vector<8x32xf32>, vector<32x128xf32>, vector<8x128xf32> -> vector<8x128xf32>
    %801 = arith.addf %797, %800 : vector<8x128xf32>
    %c4_337 = arith.constant 4 : index
    %c0_338 = arith.constant 0 : index
    %c0_339 = arith.constant 0 : index
    %802 = vector.load %arg5[%c4_337, %c0_338, %c0_339] : memref<8x32x128xf32, #tpu.memory_space<vmem>>, vector<1x32x128xf32>
    %803 = vector.shape_cast %802 : vector<1x32x128xf32> to vector<32x128xf32>
    %cst_340 = arith.constant dense<0.000000e+00> : vector<8x128xf32>
    %804 = tpu.matmul %744, %803, %cst_340 {dimension_numbers = #tpu.dot_dimension_numbers<[1], [0], [0], [1], [0, 0, 1, 1], [], []>} : vector<8x32xf32>, vector<32x128xf32>, vector<8x128xf32> -> vector<8x128xf32>
    %805 = arith.addf %801, %804 : vector<8x128xf32>
    %c5_341 = arith.constant 5 : index
    %c0_342 = arith.constant 0 : index
    %c0_343 = arith.constant 0 : index
    %806 = vector.load %arg5[%c5_341, %c0_342, %c0_343] : memref<8x32x128xf32, #tpu.memory_space<vmem>>, vector<1x32x128xf32>
    %807 = vector.shape_cast %806 : vector<1x32x128xf32> to vector<32x128xf32>
    %cst_344 = arith.constant dense<0.000000e+00> : vector<8x128xf32>
    %808 = tpu.matmul %755, %807, %cst_344 {dimension_numbers = #tpu.dot_dimension_numbers<[1], [0], [0], [1], [0, 0, 1, 1], [], []>} : vector<8x32xf32>, vector<32x128xf32>, vector<8x128xf32> -> vector<8x128xf32>
    %809 = arith.addf %805, %808 : vector<8x128xf32>
    %c6_345 = arith.constant 6 : index
    %c0_346 = arith.constant 0 : index
    %c0_347 = arith.constant 0 : index
    %810 = vector.load %arg5[%c6_345, %c0_346, %c0_347] : memref<8x32x128xf32, #tpu.memory_space<vmem>>, vector<1x32x128xf32>
    %811 = vector.shape_cast %810 : vector<1x32x128xf32> to vector<32x128xf32>
    %cst_348 = arith.constant dense<0.000000e+00> : vector<8x128xf32>
    %812 = tpu.matmul %766, %811, %cst_348 {dimension_numbers = #tpu.dot_dimension_numbers<[1], [0], [0], [1], [0, 0, 1, 1], [], []>} : vector<8x32xf32>, vector<32x128xf32>, vector<8x128xf32> -> vector<8x128xf32>
    %813 = arith.addf %809, %812 : vector<8x128xf32>
    %c7_349 = arith.constant 7 : index
    %c0_350 = arith.constant 0 : index
    %c0_351 = arith.constant 0 : index
    %814 = vector.load %arg5[%c7_349, %c0_350, %c0_351] : memref<8x32x128xf32, #tpu.memory_space<vmem>>, vector<1x32x128xf32>
    %815 = vector.shape_cast %814 : vector<1x32x128xf32> to vector<32x128xf32>
    %cst_352 = arith.constant dense<0.000000e+00> : vector<8x128xf32>
    %816 = tpu.matmul %777, %815, %cst_352 {dimension_numbers = #tpu.dot_dimension_numbers<[1], [0], [0], [1], [0, 0, 1, 1], [], []>} : vector<8x32xf32>, vector<32x128xf32>, vector<8x128xf32> -> vector<8x128xf32>
    %817 = arith.addf %813, %816 : vector<8x128xf32>
    %cst_353 = arith.constant 0.000000e+00 : f32
    %818 = vector.broadcast %cst_353 : f32 to vector<8x128xf32>
    %819 = arith.maximumf %817, %818 : vector<8x128xf32>
    %820 = math.absf %817 : vector<8x128xf32>
    %cst_354 = arith.constant 0.000000e+00 : f32
    %821 = vector.broadcast %cst_354 : f32 to vector<8x128xf32>
    %822 = arith.subf %821, %820 : vector<8x128xf32>
    %823 = math.exp %822 : vector<8x128xf32>
    %824 = math.log1p %823 : vector<8x128xf32>
    %825 = arith.addf %819, %824 : vector<8x128xf32>
    %c0_355 = arith.constant 0 : index
    %c0_356 = arith.constant 0 : index
    %826 = vector.load %arg6[%c0_355, %c0_356] : memref<8x128xf32, #tpu.memory_space<vmem>>, vector<8x128xf32>
    tpu.vector_store %arg6[%c0_355, %c0_356], %825 {strides = array<i32>} : memref<8x128xf32, #tpu.memory_space<vmem>>, vector<8x128xf32>,
    return
  }
  func.func @transform_0(%arg0: i32) -> (i32, i32) {
    %c0_i32 = arith.constant 0 : i32
    %c0_i32_0 = arith.constant 0 : i32
    return %arg0, %c0_i32 : i32, i32
  }
  func.func @transform_1(%arg0: i32) -> (i32, i32) {
    %c0_i32 = arith.constant 0 : i32
    %c0_i32_0 = arith.constant 0 : i32
    %c0_i32_1 = arith.constant 0 : i32
    return %c0_i32, %c0_i32_0 : i32, i32
  }
  func.func @transform_2(%arg0: i32) -> (i32, i32, i32) {
    %c0_i32 = arith.constant 0 : i32
    %c0_i32_0 = arith.constant 0 : i32
    %c0_i32_1 = arith.constant 0 : i32
    %c0_i32_2 = arith.constant 0 : i32
    return %c0_i32, %c0_i32_0, %c0_i32_1 : i32, i32, i32
  }
  func.func @transform_3(%arg0: i32) -> (i32, i32) {
    %c0_i32 = arith.constant 0 : i32
    %c0_i32_0 = arith.constant 0 : i32
    %c0_i32_1 = arith.constant 0 : i32
    return %c0_i32, %c0_i32_0 : i32, i32
  }
  func.func @transform_4(%arg0: i32) -> (i32, i32, i32) {
    %c0_i32 = arith.constant 0 : i32
    %c0_i32_0 = arith.constant 0 : i32
    %c0_i32_1 = arith.constant 0 : i32
    %c0_i32_2 = arith.constant 0 : i32
    return %c0_i32, %c0_i32_0, %c0_i32_1 : i32, i32, i32
  }
  func.func @transform_5(%arg0: i32) -> (i32, i32) {
    %c0_i32 = arith.constant 0 : i32
    %c0_i32_0 = arith.constant 0 : i32
    return %arg0, %c0_i32 : i32, i32
  }
}

</mosaic_0001>

<bundles_post_ra>
// kernel: tpu_custom_call.1
= control target key start
LH: loop header
LB: loop body
LE: loop exit
PB: predicated region body
PF: predicated region fallthrough
CT: control target
= control target key end

     0   :  { %10 = vsyncpa [#allocation3], 0  ;;  %s2707_s0 = inlined_call_operand.hbm [shape: f32[8,16], index: 0, kind: input, shape index: {}]   ;;  %s2708_s1 = inlined_call_operand.hbm [shape: f32[16,128], index: 1, kind: input, shape index: {}]   ;;  %s2709_s2 = inlined_call_operand.hbm [shape: f32[8,16,128], index: 2, kind: input, shape index: {}]   ;;  %s2710_s3 = inlined_call_operand.hbm [shape: f32[32,128], index: 3, kind: input, shape index: {}]   ;;  %s2711_s4 = inlined_call_operand.hbm [shape: f32[8,32,128], index: 4, kind: input, shape index: {}]   ;;  %s2712_s5 = inlined_call_operand.hbm [shape: f32[8,128], index: 5, kind: output, shape index: {}]  }
   0x1   :  { %11 = vsyncpa [#allocation6], 0 }
   0x2   :  { %12 = vsyncpa [#allocation9], 0 }
   0x3   :  { %13 = vsyncpa [#allocation4], 0  ;;  %s2289_s18 = smov [#allocation5]  }
   0x4   :  { %s29_s19 = sshll.u32 %s2289_s18, 4  ;;  %s30_s19 = int_to_ptr.vmem [resolvable:$true] %s29_s19 }
   0x5   :  { %s2169_s20 = scalar_lea.vmem %s30_s19, 256  ;;  %p2174_p1 = scmp.lt.s32.totalorder %s30_s19, %s30_s19 }
   0x6   :  { %p2170_p0 = scmp.ne.s32.totalorder %s30_s19, %s2169_s20  ;;  %p2175_p2 = scmp.lt.s32.totalorder %s2169_s20, %s2169_s20 }
   0x8   :  { %p2176_p3 = por %p2175_p2, %p2174_p1 }
   0xa   :  { %p2177_p4 = pnand %p2176_p3, %p2170_p0 }
   0xc   :  { %2180 = shalt.err (!%p2177_p4)
}
   0xd   :  { %s2290_s21 = smov 128   ;;  %s2291_s22 = smov 8  }
   0xe   :  { %35 = dma.hbm_to_vmem [thread:$0]  %s2708_s1, 256, %s30_s19, [#allocation6], %s2290_s21, %s2290_s21, %s2291_s22  }
   0xf   :  { %s2292_s25 = smov [#allocation8]   ;;  %s2293_s27 = smov [#allocation2]  }
  0x10   :  { %s53_s26 = sshll.u32 %s2292_s25, 4  ;;  %s20_s28 = sshll.u32 %s2293_s27, 4  ;;  %s54_s26 = int_to_ptr.vmem [resolvable:$true] %s53_s26  ;;  %s21_s28 = int_to_ptr.vmem [resolvable:$true] %s20_s28 }
  0x11   :  { %s2189_s29 = scalar_lea.vmem %s54_s26, 512  ;;  %p2194_p6 = scmp.lt.s32.totalorder %s54_s26, %s54_s26 }
  0x12   :  { %p2190_p5 = scmp.ne.s32.totalorder %s54_s26, %s2189_s29  ;;  %p2195_p7 = scmp.lt.s32.totalorder %s2189_s29, %s2189_s29 }
  0x14   :  { %p2196_p8 = por %p2195_p7, %p2194_p6 }
  0x16   :  { %p2197_p9 = pnand %p2196_p8, %p2190_p5 }
  0x18   :  { %2200 = shalt.err (!%p2197_p9)
}
  0x19   :  { %59 = dma.hbm_to_vmem [thread:$0]  %s2710_s3, 512, %s54_s26, [#allocation9], %s2290_s21, %s2290_s21, %s2291_s22  }
  0x1a   :  { %s2209_s1 = scalar_lea.vmem %s21_s28, 128  ;;  %p2214_p11 = scmp.lt.s32.totalorder %s21_s28, %s21_s28 }
  0x1b   :  { %p2210_p10 = scmp.ne.s32.totalorder %s21_s28, %s2209_s1  ;;  %p2215_p12 = scmp.lt.s32.totalorder %s2209_s1, %s2209_s1 }
  0x1d   :  { %p2216_p13 = por %p2215_p12, %p2214_p11 }
  0x1f   :  { %p2217_p0 = pnand %p2216_p13, %p2210_p10 }
  0x21   :  { %2220 = shalt.err (!%p2217_p0)
}
  0x22   :  { %23 = dma.hbm_to_vmem [thread:$0]  %s2707_s0, 128, %s21_s28, [#allocation3]  }
  0x23   :  { %s2294_s9 = smov [#allocation7]   ;;  %s2295_s11 = smov [#allocation10]  }
  0x24   :  { %s41_s10 = sshll.u32 %s2294_s9, 4  ;;  %s65_s12 = sshll.u32 %s2295_s11, 4  ;;  %s42_s10 = int_to_ptr.vmem [resolvable:$true] %s41_s10  ;;  %s66_s12 = int_to_ptr.vmem [resolvable:$true] %s65_s12 }
  0x25   :  { %s2229_s13 = scalar_lea.vmem %s42_s10, 2048  ;;  %p2234_p2 = scmp.lt.s32.totalorder %s42_s10, %s42_s10 }
  0x26   :  { %p2230_p1 = scmp.ne.s32.totalorder %s42_s10, %s2229_s13  ;;  %p2235_p3 = scmp.lt.s32.totalorder %s2229_s13, %s2229_s13 }
  0x28   :  { %p2236_p4 = por %p2235_p3, %p2234_p2 }
  0x2a   :  { %p2237_p5 = pnand %p2236_p4, %p2230_p1 }
  0x2c   :  { %2240 = shalt.err (!%p2237_p5)
}
  0x2d   :  { %47 = dma.hbm_to_vmem [thread:$0]  %s2709_s2, 2048, %s42_s10, [#allocation6], %s2290_s21, %s2290_s21, %s2291_s22  }
  0x2e   :  { %s2249_s0 = scalar_lea.vmem %s66_s12, 4096  ;;  %p2254_p7 = scmp.lt.s32.totalorder %s66_s12, %s66_s12 }
  0x2f   :  { %p2250_p6 = scmp.ne.s32.totalorder %s66_s12, %s2249_s0  ;;  %p2255_p8 = scmp.lt.s32.totalorder %s2249_s0, %s2249_s0 }
  0x31   :  { %p2256_p9 = por %p2255_p8, %p2254_p7 }
  0x33   :  { %p2257_p10 = pnand %p2256_p9, %p2250_p6 }
  0x35   :  { %2260 = shalt.err (!%p2257_p10)
}
  0x36   :  { %71 = dma.hbm_to_vmem [thread:$0]  %s2711_s4, 4096, %s66_s12, [#allocation9], %s2290_s21, %s2290_s21, %s2291_s22  }
  0x37   :  { %2281 = dma.done.wait [#allocation3], 128  }
  0x38   :  { %2282 = vsyncadd [#allocation3], 4294967168 }
  0x39   :  { %2283 = dma.done.wait [#allocation6], 2304  }
  0x3a   :  { %2284 = vsyncadd [#allocation6], 4294964992 }
  0x3b   :  { %2285 = dma.done.wait [#allocation9], 4608  }
  0x3c   :  { %2286 = vsyncadd [#allocation9], 4294962688  ;;  %v2296_v0 = vmov 0.0   ;;  %vm2297_vm0 = vmmov 0   ;;  %v274_v1 = vld [vmem:[#allocation7 + $0x8] sm:$0xff]  ;;  %v273_v2 = vld [vmem:[#allocation7] sm:$0xff] }
  0x3d   :  { %1977 = vmatprep.subr.mxu0 %v2296_v0  ;;  %1981 = vmatprep.mubr.msk.f32.mxu0 %vm2297_vm0, %v2296_v0  ;;  %v2362_v3 = vld [vmem:[#allocation2] sm:$0xff]  ;;  %v272_v7 = vld [vmem:[#allocation5 + $0x8] sm:$0xff]  ;;  %v271_v9 = vld [vmem:[#allocation5] sm:$0xff]  ;;  %vm275_vm8 = vcmask 130048   ;;  %s2298_s2 = smov [#allocation11]  }
  0x3e   :  { %1984 = vmatprep.subr.mxu1 %v2296_v0  ;;  %1988 = vmatprep.mubr.msk.f32.mxu1 %vm2297_vm0, %v2296_v0  ;;  %vm88_vm1 = vcmp.ge.f32.partialorder %v2362_v3, -2.2  ;;  %vm90_vm2 = vcmp.ge.f32.partialorder %v2362_v3, -1.8  ;;  %vm93_vm3 = vcmp.ge.f32.partialorder %v2362_v3, -1.4 }
  0x3f   :  { %1978 = vmatpush3.msra.mxu0 %v274_v1  ;;  %v89_v4 = vsel %vm88_vm1, 1.0, %v2296_v0  ;;  %v91_v5 = vsel %vm90_vm2, 1.0, %v2296_v0  ;;  %v94_v6 = vsel %vm93_vm3, 1.0, %v2296_v0  ;;  %vm96_vm4 = vcmp.ge.f32.partialorder %v2362_v3, -1.0  ;;  %1985 = vmatpush3.msra.mxu1 %v272_v7  ;;  %s1874_s4 = sshll.u32 %s2298_s2, 4  ;;  %s1875_s4 = int_to_ptr.vmem [resolvable:$true] %s1874_s4 }
  0x40   :  { %1979 = vmatprep.subr.mxu0 %v2296_v0  ;;  %v97_v8 = vsel %vm96_vm4, 1.0, %v2296_v0  ;;  %vm99_vm5 = vcmp.ge.f32.partialorder %v2362_v3, -0.6  ;;  %vm102_vm6 = vcmp.ge.f32.partialorder %v2362_v3, -0.2  ;;  %1986 = vmatprep.subr.mxu1 %v2296_v0  ;;  %v92_v11 = vsub.f32 %v89_v4, %v91_v5  ;;  %s2261_s17 = scalar_lea.vmem %s1875_s4, 128  ;;  %p2266_p12 = scmp.lt.s32.totalorder %s1875_s4, %s1875_s4 }
  0x41   :  { %1980 = vmatpush3.msra.mxu0 %v273_v2  ;;  %v100_v10 = vsel %vm99_vm5, 1.0, %v2296_v0  ;;  %vm105_vm7 = vcmp.ge.f32.partialorder %v2362_v3, 0.2  ;;  %v95_v12 = vsub.f32 %v91_v5, %v94_v6  ;;  %v98_v13 = vsub.f32 %v94_v6, %v97_v8  ;;  %1987 = vmatpush3.msra.mxu1 %v271_v9  ;;  %p2262_p11 = scmp.ne.s32.totalorder %s1875_s4, %s2261_s17  ;;  %p2267_p13 = scmp.lt.s32.totalorder %s2261_s17, %s2261_s17 }
  0x42   :  { %1991 = vmatprep.subr.mxu0 %v2296_v0  ;;  %v2380_v14 = vmul.f32 2.5, %v2362_v3  ;;  %v101_v15 = vsub.f32 %v97_v8, %v100_v10  ;;  %v103_v16 = vsel %vm102_vm6, 1.0, %v2296_v0  ;;  %v2384_v17 = vmul.f32 -2.5, %v2362_v3  ;;  %1998 = vmatprep.subr.mxu1 %v2296_v0 }
  0x43   :  { %v2387_v18 = vmul.f32 1.25, %v2362_v3  ;;  %v2391_v19 = vsel %vm105_vm7, 1.0, %v2296_v0  ;;  %v2402_v34 = vmul.f32 -1.25, %v2362_v3  ;;  %v104_v35 = vsub.f32 %v100_v10, %v103_v16  ;;  %p2268_p0 = por %p2267_p13, %p2266_p12 }
  0x44   :  { %v124_v20 = vadd.f32 5.5, %v2380_v14  ;;  %v130_v21 = vadd.f32 4.5, %v2380_v14  ;;  %v135_v22 = vadd.f32 3.5, %v2380_v14  ;;  %v127_v23 = vadd.f32 -3.5, %v2384_v17 }
  0x45   :  { %v132_v24 = vadd.f32 -2.5, %v2384_v17  ;;  %v137_v25 = vadd.f32 -1.5, %v2384_v17  ;;  %v140_v26 = vadd.f32 2.5, %v2380_v14  ;;  %v176_v30 = vadd.f32 2.75, %v2387_v18  ;;  %p2269_p1 = pnand %p2268_p0, %p2262_p11 }
  0x46   :  { %v125_v27 = vmul.f32 %v124_v20, %v92_v11  ;;  %v131_v28 = vmul.f32 %v130_v21, %v95_v12  ;;  %v136_v29 = vmul.f32 %v135_v22, %v98_v13  ;;  %v128_v31 = vmul.f32 %v127_v23, %v95_v12  ;;  %v424_v12 = vld [vmem:[#allocation7 + $0x18] sm:$0xff] }
  0x47   :  { %v133_v32 = vmul.f32 %v132_v24, %v98_v13  ;;  %v138_v33 = vmul.f32 %v137_v25, %v101_v15  ;;  %v182_v36 = vadd.f32 2.25, %v2387_v18  ;;  %v2406_v37 = vmul.f32 0.8333333, %v2362_v3  ;;  %v423_v25 = vld [vmem:[#allocation7 + $0x10] sm:$0xff] }
  0x48   :  { %v2409_v38 = vmul.f32 -0.8333333, %v2362_v3  ;;  %v129_v39 = vadd.f32 %v128_v31, %v125_v27  ;;  %v179_v42 = vadd.f32 -1.25, %v2402_v34  ;;  %v107_v43 = vsub.f32 %v103_v16, %v2391_v19 }
  0x49   :  { %v134_v40 = vadd.f32 %v133_v32, %v131_v28  ;;  %v139_v41 = vadd.f32 %v138_v33, %v136_v29  ;;  %v141_v44 = vmul.f32 %v140_v26, %v101_v15  ;;  %v184_v45 = vadd.f32 -0.75, %v2402_v34 }
  0x4a   :  { %v187_v46 = vadd.f32 1.75, %v2387_v18  ;;  %v177_v47 = vmul.f32 %v176_v30, %v129_v39  ;;  %v223_v50 = vadd.f32 1.8333334, %v2406_v37  ;;  %v226_v52 = vadd.f32 -0.5, %v2409_v38 }
  0x4b   :  { %v180_v48 = vmul.f32 %v179_v42, %v134_v40  ;;  %v183_v49 = vmul.f32 %v182_v36, %v134_v40  ;;  %v185_v51 = vmul.f32 %v184_v45, %v139_v41  ;;  %v1885_v53 = vmul.f32 -1.442695, %v2362_v3  ;;  %v578_v40 = vld [vmem:[#allocation7 + $0x38] sm:$0xff] }
  0x4c   :  { %v142_v54 = vadd.f32 -0.5, %v2384_v17  ;;  %v189_v56 = vadd.f32 -0.25, %v2402_v34  ;;  %v145_v57 = vadd.f32 1.5, %v2380_v14  ;;  %v147_v58 = vadd.f32 0.5, %v2384_v17 }
  0x4d   :  { %v181_v55 = vadd.f32 %v180_v48, %v177_v47  ;;  %v186_v59 = vadd.f32 %v185_v51, %v183_v49  ;;  %2149 = vpow2.f32 %v1885_v53  ;;  %v192_v61 = vadd.f32 1.25, %v2387_v18 }
  0x4e   :  { %v143_v60 = vmul.f32 %v142_v54, %v104_v35  ;;  %v146_v63 = vmul.f32 %v145_v57, %v104_v35  ;;  %v148_v1 = vmul.f32 %v147_v58, %v107_v43  ;;  %v194_v2 = vadd.f32 0.25, %v2402_v34 }
  0x4f   :  { %v224_v62 = vmul.f32 %v223_v50, %v181_v55  ;;  %v188_v4 = vmul.f32 %v187_v46, %v139_v41  ;;  %v227_v5 = vmul.f32 %v226_v52, %v186_v59  ;;  %v229_v6 = vadd.f32 1.5, %v2406_v37  ;;  %v577_v46 = vld [vmem:[#allocation7 + $0x30] sm:$0xff] }
  0x50   :  { %v144_v7 = vadd.f32 %v143_v60, %v141_v44  ;;  %v231_v8 = vadd.f32 -0.16666667, %v2409_v38  ;;  %v149_v9 = vadd.f32 %v148_v1, %v146_v63  ;;  %vm108_vm9 = vcmp.ge.f32.partialorder %v2362_v3, 0.6 }
  0x51   :  { %v150_v10 = vadd.f32 0.5, %v2380_v14  ;;  %v228_v11 = vadd.f32 %v227_v5, %v224_v62  ;;  %v109_v16 = vsel %vm108_vm9, 1.0, %v2296_v0  ;;  %v152_v23 = vadd.f32 1.5, %v2384_v17 }
  0x52   :  { %v190_v13 = vmul.f32 %v189_v56, %v144_v7  ;;  %v193_v15 = vmul.f32 %v192_v61, %v144_v7  ;;  %v195_v20 = vmul.f32 %v194_v2, %v149_v9  ;;  %v110_v21 = vsub.f32 %v2391_v19, %v109_v16  ;;  %v732_v2 = vld [vmem:[#allocation7 + $0x58] sm:$0xff] }
  0x53   :  { %v151_v22 = vmul.f32 %v150_v10, %v107_v43  ;;  %v230_v24 = vmul.f32 %v229_v6, %v186_v59  ;;  %1982 = vmatmul.mubr.msk.f32.vlgmr.msra.gmra.mxu0 %vm275_vm8, %v228_v11  ;;  %v197_v27 = vadd.f32 0.75, %v2387_v18  ;;  %v199_v29 = vadd.f32 0.75, %v2402_v34  ;;  %v731_v10 = vld [vmem:[#allocation7 + $0x50] sm:$0xff] }
  0x54   :  { %v2432_v26 = vadd.f32 %v190_v13, %v188_v4  ;;  %1992 = vmatpush3.msra.mxu0 %v424_v12  ;;  %1995 = vmatprep.mubr.msk.f32.mxu0 %vm2297_vm0, %v2296_v0  ;;  %v153_v28 = vmul.f32 %v152_v23, %v110_v21  ;;  %vm111_vm10 = vcmp.ge.f32.partialorder %v2362_v3, 1.0  ;;  %v2441_v30 = vadd.f32 %v195_v20, %v193_v15 }
  0x55   :  { %1993 = vmatprep.subr.mxu0 %v2296_v0  ;;  %v239_v31 = vadd.f32 0.8333333, %v2406_v37  ;;  %v112_v32 = vsel %vm111_vm10, 1.0, %v2296_v0  ;;  %v198_v35 = vmul.f32 %v197_v27, %v149_v9  ;;  %v155_v41 = vadd.f32 -0.5, %v2380_v14 }
  0x56   :  { %v232_v19 = vmul.f32 %v231_v8, %v2432_v26  ;;  %1994 = vmatpush3.msra.mxu0 %v423_v25  ;;  %v154_v33 = vadd.f32 %v153_v28, %v151_v22  ;;  %v113_v36 = vsub.f32 %v109_v16, %v112_v32  ;;  %v157_v42 = vadd.f32 2.5, %v2384_v17 }
  0x57   :  { %2005 = vmatprep.subr.mxu0 %v2296_v0  ;;  %v202_v43 = vadd.f32 0.25, %v2387_v18  ;;  %v241_v45 = vadd.f32 0.5, %v2409_v38  ;;  %v240_v47 = vmul.f32 %v239_v31, %v2441_v30  ;;  %v156_v48 = vmul.f32 %v155_v41, %v110_v21 }
  0x58   :  { %v233_v39 = vadd.f32 %v232_v19, %v230_v24  ;;  %v200_v44 = vmul.f32 %v199_v29, %v154_v33  ;;  %v158_v49 = vmul.f32 %v157_v42, %v113_v36  ;;  %v204_v50 = vadd.f32 1.25, %v2402_v34 }
  0x59   :  { %vm114_vm11 = vcmp.ge.f32.partialorder %v2362_v3, 1.4  ;;  %v160_v53 = vadd.f32 -1.5, %v2380_v14  ;;  %v162_v54 = vadd.f32 3.5, %v2384_v17  ;;  %v203_v57 = vmul.f32 %v202_v43, %v154_v33 }
  0x5a   :  { %1996 = vmatmul.mubr.msk.f32.vlgmr.msra.gmra.mxu0 %vm275_vm8, %v233_v39  ;;  %v2150_v51 = vpop.eup %2149  ;;  %v2455_v52 = vadd.f32 %v200_v44, %v198_v35  ;;  %v159_v56 = vadd.f32 %v158_v49, %v156_v48  ;;  %v115_v58 = vsel %vm114_vm11, 1.0, %v2296_v0  ;;  %v207_v62 = vadd.f32 -0.25, %v2387_v18 }
  0x5b   :  { %2006 = vmatpush3.msra.mxu0 %v578_v40  ;;  %2009 = vmatprep.mubr.msk.f32.mxu0 %vm2297_vm0, %v2296_v0  ;;  %v267_v55 = vadd.f32 1.0, %v2150_v51  ;;  %v116_v60 = vsub.f32 %v112_v32, %v115_v58  ;;  %v161_v61 = vmul.f32 %v160_v53, %v113_v36  ;;  %v209_v5 = vadd.f32 1.75, %v2402_v34 }
  0x5c   :  { %2007 = vmatprep.subr.mxu0 %v2296_v0  ;;  %v242_v59 = vmul.f32 %v241_v45, %v2455_v52  ;;  %v205_v63 = vmul.f32 %v204_v50, %v159_v56  ;;  %v249_v6 = vadd.f32 0.16666667, %v2406_v37  ;;  %vm117_vm12 = vcmp.ge.f32.partialorder %v2362_v3, 1.8 }
  0x5d   :  { %2008 = vmatpush3.msra.mxu0 %v577_v46  ;;  %2151 = vrcp.f32 %v267_v55  ;;  %v163_v4 = vmul.f32 %v162_v54, %v116_v60  ;;  %v165_v8 = vadd.f32 -2.5, %v2380_v14  ;;  %v167_v9 = vadd.f32 4.5, %v2384_v17 }
  0x5e   :  { %2019 = vmatprep.subr.mxu0 %v2296_v0  ;;  %v243_v1 = vadd.f32 %v242_v59, %v240_v47  ;;  %v206_v7 = vadd.f32 %v205_v63, %v203_v57  ;;  %v208_v12 = vmul.f32 %v207_v62, %v159_v56  ;;  %v118_v13 = vsel %vm117_vm12, 1.0, %v2296_v0  ;;  %v500_v59 = vld [vmem:[#allocation7 + $0x20] sm:$0xff] }
  0x5f   :  { %v164_v11 = vadd.f32 %v163_v4, %v161_v61  ;;  %v212_v15 = vadd.f32 -0.75, %v2387_v18  ;;  %v234_v16 = vadd.f32 1.1666666, %v2406_v37  ;;  %v236_v20 = vadd.f32 0.16666667, %v2409_v38 }
  0x60   :  { %2010 = vmatmul.mubr.msk.f32.vlgmr.msra.gmra.mxu0 %vm275_vm8, %v243_v1  ;;  %v119_v21 = vsub.f32 %v115_v58, %v118_v13  ;;  %v251_v23 = vadd.f32 1.1666666, %v2409_v38  ;;  %v166_v24 = vmul.f32 %v165_v8, %v116_v60  ;;  %v214_v25 = vadd.f32 2.25, %v2402_v34  ;;  %v1151_v8 = vld [vmem:[#allocation10 + $0x18] sm:$0xff] }
  0x61   :  { %2020 = vmatpush3.msra.mxu0 %v732_v2  ;;  %2023 = vmatprep.mubr.msk.f32.mxu0 %vm2297_vm0, %v2296_v0  ;;  %v210_v22 = vmul.f32 %v209_v5, %v164_v11  ;;  %v250_v27 = vmul.f32 %v249_v6, %v206_v7  ;;  %vm120_vm13 = vcmp.ge.f32.partialorder %v2362_v3, 2.2  ;;  %v170_v29 = vadd.f32 -3.5, %v2380_v14  ;;  %v809_v5 = vld [vmem:[#allocation7 + $0x68] sm:$0xff]  ;;  %v808_v6 = vld [vmem:[#allocation7 + $0x60] sm:$0xff] }
  0x62   :  { %2021 = vmatprep.subr.mxu0 %v2296_v0  ;;  %v168_v28 = vmul.f32 %v167_v9, %v119_v21  ;;  %v213_v31 = vmul.f32 %v212_v15, %v164_v11  ;;  %v121_v32 = vsel %vm120_vm13, 1.0, %v2296_v0  ;;  %v172_v33 = vadd.f32 5.5, %v2384_v17  ;;  %v886_v17 = vld [vmem:[#allocation7 + $0x78] sm:$0xff]  ;;  %v1150_v9 = vld [vmem:[#allocation10 + $0x10] sm:$0xff]  ;;  %v1148_v11 = vld [vmem:[#allocation10] sm:$0xff] }
  0x63   :  { %2022 = vmatpush3.msra.mxu0 %v731_v10  ;;  %v211_v19 = vadd.f32 %v210_v22, %v208_v12  ;;  %v122_v36 = vsub.f32 %v118_v13, %v121_v32  ;;  %v171_v39 = vmul.f32 %v170_v29, %v119_v21  ;;  %v217_v40 = vadd.f32 -1.25, %v2387_v18  ;;  %v1149_v10 = vld [vmem:[#allocation10 + $0x8] sm:$0xff]  ;;  %v1147_v12 = vld [vmem:[#allocation8 + $0x18] sm:$0xff]  ;;  %v1146_v13 = vld [vmem:[#allocation8 + $0x10] sm:$0xff] }
  0x64   :  { %2033 = vmatprep.subr.mxu0 %v2296_v0  ;;  %v169_v35 = vadd.f32 %v168_v28, %v166_v24  ;;  %v235_v42 = vmul.f32 %v234_v16, %v2432_v26  ;;  %v219_v14 = vadd.f32 2.75, %v2402_v34  ;;  %v237_v45 = vmul.f32 %v236_v20, %v2441_v30  ;;  %v885_v26 = vld [vmem:[#allocation7 + $0x70] sm:$0xff]  ;;  %v501_v34 = vld [vmem:[#allocation7 + $0x28] sm:$0xff]  ;;  %v1144_v16 = vld [vmem:[#allocation8] sm:$0xff] }
  0x65   :  { %v252_v41 = vmul.f32 %v251_v23, %v211_v19  ;;  %v173_v44 = vmul.f32 %v172_v33, %v122_v36  ;;  %v244_v46 = vadd.f32 0.5, %v2406_v37  ;;  %v246_v47 = vadd.f32 0.8333333, %v2409_v38  ;;  %v1145_v15 = vld [vmem:[#allocation8 + $0x8] sm:$0xff] }
  0x66   :  { %v215_v43 = vmul.f32 %v214_v25, %v169_v35  ;;  %v218_v51 = vmul.f32 %v217_v40, %v169_v35  ;;  %v259_v18 = vadd.f32 -0.5, %v2406_v37  ;;  %v261_v55 = vadd.f32 1.8333334, %v2409_v38 }
  0x67   :  { %v253_v48 = vadd.f32 %v252_v41, %v250_v27  ;;  %v174_v50 = vadd.f32 %v173_v44, %v171_v39  ;;  %v238_v56 = vadd.f32 %v237_v45, %v235_v42  ;;  %v245_v57 = vmul.f32 %v244_v46, %v2455_v52  ;;  %v655_v52 = vld [vmem:[#allocation7 + $0x48] sm:$0xff] }
  0x68   :  { %v216_v49 = vadd.f32 %v215_v43, %v213_v31  ;;  %v247_v58 = vmul.f32 %v246_v47, %v206_v7  ;;  %v256_v60 = vadd.f32 1.5, %v2409_v38  ;;  %vm1152_vm4 = vcmask 261120  }
  0x69   :  { %2024 = vmatmul.mubr.msk.f32.vlgmr.msra.gmra.mxu0 %vm275_vm8, %v253_v48  ;;  %v220_v30 = vmul.f32 %v219_v14, %v174_v50 }
  0x6a   :  { %v2152_v53 = vpop.eup %2151  ;;  %2034 = vmatpush3.msra.mxu0 %v886_v17  ;;  %2037 = vmatprep.mubr.msk.f32.mxu0 %vm2297_vm0, %v2296_v0  ;;  %v260_v62 = vmul.f32 %v259_v18, %v216_v49  ;;  %v248_v1 = vadd.f32 %v247_v58, %v245_v57  ;;  %v257_v2 = vmul.f32 %v256_v60, %v216_v49 }
  0x6b   :  { %v270_v54 = vmul.f32 %v2152_v53, %v2362_v3  ;;  %2035 = vmatprep.subr.mxu0 %v2296_v0  ;;  %v254_v3 = vadd.f32 -0.16666667, %v2406_v37  ;;  %v221_v61 = vadd.f32 %v220_v30, %v218_v51  ;;  %v654_v37 = vld [vmem:[#allocation7 + $0x40] sm:$0xff] }
  0x6c   :  { %2036 = vmatpush3.msra.mxu0 %v885_v26 }
  0x6d   :  { %1989 = vmatmul.mubr.msk.f32.vlgmr.msra.gmra.mxu1 %vm275_vm8, %v270_v54  ;;  %v262_v63 = vmul.f32 %v261_v55, %v221_v61  ;;  %2051 = vmatprep.subr.mxu0 %v2296_v0  ;;  %v255_v38 = vmul.f32 %v254_v3, %v211_v19 }
  0x6e   :  { %1999 = vmatpush3.msra.mxu1 %v501_v34  ;;  %2002 = vmatprep.mubr.msk.f32.mxu1 %vm2297_vm0, %v2296_v0 }
  0x6f   :  { %2000 = vmatprep.subr.mxu1 %v2296_v0  ;;  %v263_v4 = vadd.f32 %v262_v63, %v260_v62  ;;  %v258_v7 = vadd.f32 %v257_v2, %v255_v38 }
  0x70   :  { %2001 = vmatpush3.msra.mxu1 %v500_v59 }
  0x71   :  { %2012 = vmatprep.subr.mxu1 %v2296_v0  ;;  %2003 = vmatmul.mubr.msk.f32.vlgmr.msra.gmra.mxu1 %vm275_vm8, %v238_v56 }
  0x72   :  { %2013 = vmatpush3.msra.mxu1 %v655_v52  ;;  %2016 = vmatprep.mubr.msk.f32.mxu1 %vm2297_vm0, %v2296_v0 }
  0x73   :  { %2014 = vmatprep.subr.mxu1 %v2296_v0  ;;  %2038 = vmatmul.mubr.msk.f32.vlgmr.msra.gmra.mxu0 %vm275_vm8, %v263_v4 }
  0x74   :  { %2015 = vmatpush3.msra.mxu1 %v654_v37  ;;  %2059 = vmatprep.mubr.msk.f32.mxu0 %vm2297_vm0, %v2296_v0 }
  0x75   :  { %2026 = vmatprep.subr.mxu1 %v2296_v0  ;;  %2017 = vmatmul.mubr.msk.f32.vlgmr.msra.gmra.mxu1 %vm275_vm8, %v248_v1 }
  0x76   :  { %2027 = vmatpush3.msra.mxu1 %v809_v5  ;;  %2030 = vmatprep.mubr.msk.f32.mxu1 %vm2297_vm0, %v2296_v0 }
  0x77   :  { %2028 = vmatprep.subr.mxu1 %v2296_v0  ;;  %2052 = vmatpush3.msra.mxu0 %v1147_v12 }
  0x78   :  { %2029 = vmatpush3.msra.mxu1 %v808_v6  ;;  %2053 = vmatprep.subr.mxu0 %v2296_v0 }
  0x79   :  { %2031 = vmatmul.mubr.msk.f32.vlgmr.msra.gmra.mxu1 %vm275_vm8, %v258_v7  ;;  %2040 = vmatprep.subr.mxu1 %v2296_v0 }
  0x7a   :  { %2048 = vmatprep.mubr.msk.f32.mxu1 %vm2297_vm0, %v2296_v0  ;;  %2041 = vmatpush3.msra.mxu1 %v1151_v8 }
  0x7b   :  { %2042 = vmatprep.subr.mxu1 %v2296_v0  ;;  %2054 = vmatpush3.msra.mxu0 %v1146_v13 }
  0x7c   :  { %2043 = vmatpush3.msra.mxu1 %v1150_v9  ;;  %2055 = vmatprep.subr.mxu0 %v2296_v0 }
  0x7d   :  { %2044 = vmatprep.subr.mxu1 %v2296_v0  ;;  %2056 = vmatpush3.msra.mxu0 %v1145_v15 }
  0x7e   :  { %2045 = vmatpush3.msra.mxu1 %v1149_v10  ;;  %2057 = vmatprep.subr.mxu0 %v2296_v0 }
  0x7f   :  { %2046 = vmatprep.subr.mxu1 %v2296_v0  ;;  %2058 = vmatpush3.msra.mxu0 %v1144_v16 }
  0x80   :  { %2047 = vmatpush3.msra.mxu1 %v1148_v11  ;;  %2073 = vmatprep.subr.mxu0 %v2296_v0 }
  0x81   :  { %2062 = vmatprep.subr.mxu1 %v2296_v0 }
 0x113   :  { %v345_v20 = vpop.f32.mrf.mxu0 }
 0x115   :  { %v1983_v21 = vpop.f32.mrf.mxu0 }
 0x11a   :  { %v494_v22 = vpop.f32.mrf.mxu0 }
 0x11c   :  { %v1997_v23 = vpop.f32.mrf.mxu0 }
 0x120   :  { %v648_v24 = vpop.f32.mrf.mxu0 }
 0x122   :  { %v2011_v25 = vpop.f32.mrf.mxu0 }
 0x129   :  { %v802_v27 = vpop.f32.mrf.mxu0 }
 0x12b   :  { %v2025_v28 = vpop.f32.mrf.mxu0 }
 0x12d   :  { %v418_v29 = vpop.f32.mrf.mxu1 }
 0x12e   :  { %v419_v19 = vadd.f32 %v418_v29, %v345_v20 }
 0x12f   :  { %v1990_v31 = vpop.f32.mrf.mxu1 }
 0x130   :  { %v498_v32 = vadd.f32 %v494_v22, %v419_v19 }
 0x131   :  { %v571_v33 = vpop.f32.mrf.mxu1 }
 0x132   :  { %v575_v35 = vadd.f32 %v571_v33, %v498_v32 }
 0x133   :  { %v2004_v36 = vpop.f32.mrf.mxu1  ;;  %v956_v39 = vpop.f32.mrf.mxu0 }
 0x134   :  { %v652_v40 = vadd.f32 %v648_v24, %v575_v35 }
 0x135   :  { %v725_v41 = vpop.f32.mrf.mxu1  ;;  %v2039_v42 = vpop.f32.mrf.mxu0 }
 0x136   :  { %v729_v43 = vadd.f32 %v725_v41, %v652_v40 }
 0x137   :  { %v2018_v44 = vpop.f32.mrf.mxu1 }
 0x138   :  { %v806_v14 = vadd.f32 %v802_v27, %v729_v43 }
 0x139   :  { %v879_v45 = vpop.f32.mrf.mxu1 }
 0x13a   :  { %v883_v46 = vadd.f32 %v879_v45, %v806_v14 }
 0x13b   :  { %v2032_v47 = vpop.f32.mrf.mxu1 }
 0x13c   :  { %v2531_v48 = vadd.f32 %v956_v39, %v883_v46 }
 0x13e   :  { %vm961_vm14 = vcmp.ge.f32.partialorder %v2531_v48, -2.2  ;;  %vm963_vm15 = vcmp.ge.f32.partialorder %v2531_v48, -1.8  ;;  %vm966_vm1 = vcmp.ge.f32.partialorder %v2531_v48, -1.4 }
 0x13f   :  { %v962_v17 = vsel %vm961_vm14, 1.0, %v2296_v0  ;;  %v964_v49 = vsel %vm963_vm15, 1.0, %v2296_v0  ;;  %v967_v50 = vsel %vm966_vm1, 1.0, %v2296_v0  ;;  %vm969_vm2 = vcmp.ge.f32.partialorder %v2531_v48, -1.0 }
 0x140   :  { %v965_v51 = vsub.f32 %v962_v17, %v964_v49  ;;  %v968_v18 = vsub.f32 %v964_v49, %v967_v50  ;;  %v970_v53 = vsel %vm969_vm2, 1.0, %v2296_v0  ;;  %vm972_vm3 = vcmp.ge.f32.partialorder %v2531_v48, -0.6  ;;  %v1303_v17 = vld [vmem:[#allocation10 + $0x38] sm:$0xff] }
 0x141   :  { %v971_v26 = vsub.f32 %v967_v50, %v970_v53  ;;  %v973_v54 = vsel %vm972_vm3, 1.0, %v2296_v0  ;;  %v2544_v34 = vmul.f32 2.5, %v2531_v48  ;;  %v2547_v30 = vmul.f32 -2.5, %v2531_v48 }
 0x142   :  { %v974_v55 = vsub.f32 %v970_v53, %v973_v54  ;;  %v2550_v56 = vmul.f32 1.25, %v2531_v48  ;;  %v2553_v57 = vmul.f32 -1.25, %v2531_v48  ;;  %v2562_v52 = vmul.f32 0.8333333, %v2531_v48 }
 0x143   :  { %v997_v58 = vadd.f32 5.5, %v2544_v34  ;;  %v1000_v59 = vadd.f32 -3.5, %v2547_v30  ;;  %v1003_v3 = vadd.f32 4.5, %v2544_v34  ;;  %v1005_v60 = vadd.f32 -2.5, %v2547_v30 }
 0x144   :  { %v1008_v61 = vadd.f32 3.5, %v2544_v34  ;;  %v1010_v62 = vadd.f32 -1.5, %v2547_v30  ;;  %v1049_v5 = vadd.f32 2.75, %v2550_v56  ;;  %v1052_v6 = vadd.f32 -1.25, %v2553_v57 }
 0x145   :  { %v998_v63 = vmul.f32 %v997_v58, %v965_v51  ;;  %v1001_v1 = vmul.f32 %v1000_v59, %v968_v18  ;;  %v1004_v37 = vmul.f32 %v1003_v3, %v968_v18  ;;  %v1006_v38 = vmul.f32 %v1005_v60, %v971_v26 }
 0x146   :  { %v1009_v2 = vmul.f32 %v1008_v61, %v971_v26  ;;  %v1011_v4 = vmul.f32 %v1010_v62, %v974_v55  ;;  %v1055_v9 = vadd.f32 2.25, %v2550_v56  ;;  %v2568_v10 = vmul.f32 -0.8333333, %v2531_v48 }
 0x147   :  { %v1002_v7 = vadd.f32 %v1001_v1, %v998_v63  ;;  %v1007_v8 = vadd.f32 %v1006_v38, %v1004_v37  ;;  %v1057_v12 = vadd.f32 -0.75, %v2553_v57  ;;  %vm975_vm5 = vcmp.ge.f32.partialorder %v2531_v48, -0.2  ;;  %v1301_v37 = vld [vmem:[#allocation10 + $0x28] sm:$0xff] }
 0x148   :  { %v1012_v11 = vadd.f32 %v1011_v4, %v1009_v2  ;;  %v1013_v13 = vadd.f32 2.5, %v2544_v34  ;;  %v1015_v21 = vadd.f32 -0.5, %v2547_v30  ;;  %v1096_v23 = vadd.f32 1.8333334, %v2562_v52 }
 0x149   :  { %v1050_v15 = vmul.f32 %v1049_v5, %v1002_v7  ;;  %v1053_v16 = vmul.f32 %v1052_v6, %v1007_v8  ;;  %v1056_v20 = vmul.f32 %v1055_v9, %v1007_v8  ;;  %v1099_v24 = vadd.f32 -0.5, %v2568_v10  ;;  %v1300_v9 = vld [vmem:[#allocation10 + $0x20] sm:$0xff] }
 0x14a   :  { %v1058_v22 = vmul.f32 %v1057_v12, %v1012_v11  ;;  %v976_v25 = vsel %vm975_vm5, 1.0, %v2296_v0  ;;  %v1014_v29 = vmul.f32 %v1013_v13, %v974_v55  ;;  %v1060_v19 = vadd.f32 1.75, %v2550_v56  ;;  %v1302_v55 = vld [vmem:[#allocation10 + $0x30] sm:$0xff] }
 0x14b   :  { %v1054_v27 = vadd.f32 %v1053_v16, %v1050_v15  ;;  %v977_v28 = vsub.f32 %v973_v54, %v976_v25  ;;  %v1062_v32 = vadd.f32 -0.25, %v2553_v57  ;;  %v1102_v33 = vadd.f32 1.5, %v2562_v52 }
 0x14c   :  { %v1059_v31 = vadd.f32 %v1058_v22, %v1056_v20  ;;  %vm978_vm6 = vcmp.ge.f32.partialorder %v2531_v48, 0.2  ;;  %vm981_vm7 = vcmp.ge.f32.partialorder %v2531_v48, 0.6  ;;  %v1061_v41 = vmul.f32 %v1060_v19, %v1012_v11 }
 0x14d   :  { %v1097_v35 = vmul.f32 %v1096_v23, %v1054_v27  ;;  %v1016_v36 = vmul.f32 %v1015_v21, %v977_v28  ;;  %v979_v39 = vsel %vm978_vm6, 1.0, %v2296_v0  ;;  %v982_v43 = vsel %vm981_vm7, 1.0, %v2296_v0  ;;  %v1461_v21 = vld [vmem:[#allocation10 + $0x78] sm:$0xff] }
 0x14e   :  { %v1100_v40 = vmul.f32 %v1099_v24, %v1059_v31  ;;  %v980_v42 = vsub.f32 %v976_v25, %v979_v39  ;;  %v983_v14 = vsub.f32 %v979_v39, %v982_v43  ;;  %v1018_v45 = vadd.f32 1.5, %v2544_v34 }
 0x14f   :  { %v1017_v44 = vadd.f32 %v1016_v36, %v1014_v29  ;;  %v1020_v46 = vadd.f32 0.5, %v2547_v30  ;;  %v1104_v49 = vadd.f32 -0.16666667, %v2568_v10  ;;  %v1023_v50 = vadd.f32 0.5, %v2544_v34 }
 0x150   :  { %v1101_v47 = vadd.f32 %v1100_v40, %v1097_v35  ;;  %v1025_v51 = vadd.f32 1.5, %v2547_v30  ;;  %v1019_v53 = vmul.f32 %v1018_v45, %v977_v28  ;;  %v1065_v54 = vadd.f32 1.25, %v2550_v56 }
 0x151   :  { %v1063_v18 = vmul.f32 %v1062_v32, %v1017_v44  ;;  %v1021_v26 = vmul.f32 %v1020_v46, %v980_v42  ;;  %v1103_v58 = vmul.f32 %v1102_v33, %v1059_v31  ;;  %v1024_v59 = vmul.f32 %v1023_v50, %v980_v42  ;;  %v1460_v31 = vld [vmem:[#allocation10 + $0x70] sm:$0xff] }
 0x152   :  { %2049 = vmatmul.mubr.msk.f32.vlgmr.msra.gmra.mxu1 %vm1152_vm4, %v1101_v47  ;;  %v1026_v3 = vmul.f32 %v1025_v51, %v983_v14  ;;  %v1067_v60 = vadd.f32 0.25, %v2553_v57  ;;  %v1066_v63 = vmul.f32 %v1065_v54, %v1017_v44  ;;  %v1070_v1 = vadd.f32 0.75, %v2550_v56  ;;  %v1458_v47 = vld [vmem:[#allocation10 + $0x60] sm:$0xff]  ;;  %v1619_v54 = vld [vmem:[#allocation10 + $0xb8] sm:$0xff] }
 0x153   :  { %2063 = vmatpush3.msra.mxu1 %v1303_v17  ;;  %2070 = vmatprep.mubr.msk.f32.mxu1 %vm2297_vm0, %v2296_v0  ;;  %v2594_v61 = vadd.f32 %v1063_v18, %v1061_v41  ;;  %v1022_v62 = vadd.f32 %v1021_v26, %v1019_v53  ;;  %v1072_v2 = vadd.f32 0.75, %v2553_v57  ;;  %v1895_v4 = vmul.f32 -1.442695, %v2531_v48  ;;  %v1459_v41 = vld [vmem:[#allocation10 + $0x68] sm:$0xff] }
 0x154   :  { %2064 = vmatprep.subr.mxu1 %v2296_v0  ;;  %v1027_v38 = vadd.f32 %v1026_v3, %v1024_v59  ;;  %vm984_vm8 = vcmp.ge.f32.partialorder %v2531_v48, 1.0  ;;  %vm987_vm9 = vcmp.ge.f32.partialorder %v2531_v48, 1.4  ;;  %v1028_v20 = vadd.f32 -0.5, %v2544_v34 }
 0x155   :  { %2065 = vmatpush3.msra.mxu1 %v1302_v55  ;;  %v1105_v5 = vmul.f32 %v1104_v49, %v2594_v61  ;;  %v1068_v6 = vmul.f32 %v1067_v60, %v1022_v62  ;;  %v1071_v7 = vmul.f32 %v1070_v1, %v1022_v62  ;;  %v985_v8 = vsel %vm984_vm8, 1.0, %v2296_v0 }
 0x156   :  { %2066 = vmatprep.subr.mxu1 %v2296_v0  ;;  %v1073_v11 = vmul.f32 %v1072_v2, %v1027_v38  ;;  %2153 = vpow2.f32 %v1895_v4  ;;  %v986_v12 = vsub.f32 %v982_v43, %v985_v8  ;;  %v988_v16 = vsel %vm987_vm9, 1.0, %v2296_v0 }
 0x157   :  { %2067 = vmatpush3.msra.mxu1 %v1301_v37  ;;  %v1106_v13 = vadd.f32 %v1105_v5, %v1103_v58  ;;  %v2605_v15 = vadd.f32 %v1068_v6, %v1066_v63  ;;  %v989_v23 = vsub.f32 %v985_v8, %v988_v16  ;;  %v1030_v24 = vadd.f32 2.5, %v2547_v30  ;;  %v1618_v37 = vld [vmem:[#allocation10 + $0xb0] sm:$0xff] }
 0x158   :  { %2068 = vmatprep.subr.mxu1 %v2296_v0  ;;  %v2610_v22 = vadd.f32 %v1073_v11, %v1071_v7  ;;  %v1033_v25 = vadd.f32 -1.5, %v2544_v34  ;;  %v1112_v27 = vadd.f32 0.8333333, %v2562_v52  ;;  %v1114_v28 = vadd.f32 0.5, %v2568_v10 }
 0x159   :  { %2069 = vmatpush3.msra.mxu1 %v1300_v9  ;;  %v1029_v29 = vmul.f32 %v1028_v20, %v983_v14  ;;  %v1035_v19 = vadd.f32 3.5, %v2547_v30  ;;  %v1031_v32 = vmul.f32 %v1030_v24, %v986_v12  ;;  %v1075_v35 = vadd.f32 0.25, %v2550_v56 }
 0x15a   :  { %2071 = vmatmul.mubr.msk.f32.vlgmr.msra.gmra.mxu1 %vm1152_vm4, %v1106_v13  ;;  %2084 = vmatprep.subr.mxu1 %v2296_v0  ;;  %v1034_v33 = vmul.f32 %v1033_v25, %v986_v12  ;;  %v1113_v36 = vmul.f32 %v1112_v27, %v2605_v15  ;;  %v1115_v39 = vmul.f32 %v1114_v28, %v2610_v22  ;;  %v1077_v44 = vadd.f32 1.25, %v2553_v57  ;;  %v1617_v12 = vld [vmem:[#allocation10 + $0xa8] sm:$0xff] }
 0x15b   :  { %2085 = vmatpush3.msra.mxu1 %v1461_v21  ;;  %2092 = vmatprep.mubr.msk.f32.mxu1 %vm2297_vm0, %v2296_v0  ;;  %v1036_v40 = vmul.f32 %v1035_v19, %v989_v23  ;;  %v1032_v42 = vadd.f32 %v1031_v32, %v1029_v29  ;;  %v1076_v43 = vmul.f32 %v1075_v35, %v1027_v38  ;;  %v1080_v14 = vadd.f32 -0.25, %v2550_v56  ;;  %v1777_v29 = vld [vmem:[#allocation10 + $0xf8] sm:$0xff]  ;;  %v1775_v35 = vld [vmem:[#allocation10 + $0xe8] sm:$0xff] }
 0x15c   :  { %2086 = vmatprep.subr.mxu1 %v2296_v0  ;;  %v1082_v46 = vadd.f32 1.75, %v2553_v57  ;;  %vm990_vm10 = vcmp.ge.f32.partialorder %v2531_v48, 1.8  ;;  %vm993_vm11 = vcmp.ge.f32.partialorder %v2531_v48, 2.2  ;;  %v1116_v51 = vadd.f32 %v1115_v39, %v1113_v36 }
 0x15d   :  { %2087 = vmatpush3.msra.mxu1 %v1460_v31  ;;  %v1037_v45 = vadd.f32 %v1036_v40, %v1034_v33  ;;  %v1078_v17 = vmul.f32 %v1077_v44, %v1032_v42  ;;  %v1081_v49 = vmul.f32 %v1080_v14, %v1032_v42  ;;  %v991_v50 = vsel %vm990_vm10, 1.0, %v2296_v0  ;;  %v1774_v40 = vld [vmem:[#allocation10 + $0xe0] sm:$0xff]  ;;  %v1382_v44 = vld [vmem:[#allocation10 + $0x58] sm:$0xff]  ;;  %v1381_v14 = vld [vmem:[#allocation10 + $0x50] sm:$0xff] }
 0x15e   :  { %2088 = vmatprep.subr.mxu1 %v2296_v0  ;;  %v1122_v53 = vadd.f32 0.16666667, %v2562_v52  ;;  %v992_v26 = vsub.f32 %v988_v16, %v991_v50  ;;  %v994_v58 = vsel %vm993_vm11, 1.0, %v2296_v0  ;;  %v1038_v59 = vadd.f32 -2.5, %v2544_v34 }
 0x15f   :  { %2089 = vmatpush3.msra.mxu1 %v1459_v41  ;;  %v1083_v18 = vmul.f32 %v1082_v46, %v1037_v45  ;;  %v2634_v55 = vadd.f32 %v1078_v17, %v1076_v43  ;;  %v1040_v3 = vadd.f32 4.5, %v2547_v30  ;;  %v1124_v62 = vadd.f32 1.1666666, %v2568_v10 }
 0x160   :  { %2090 = vmatprep.subr.mxu1 %v2296_v0  ;;  %v995_v63 = vsub.f32 %v991_v50, %v994_v58  ;;  %v1043_v1 = vadd.f32 -3.5, %v2544_v34  ;;  %v1039_v2 = vmul.f32 %v1038_v59, %v989_v23  ;;  %v1045_v5 = vadd.f32 5.5, %v2547_v30  ;;  %v1616_v23 = vld [vmem:[#allocation10 + $0xa0] sm:$0xff] }
 0x161   :  { %2091 = vmatpush3.msra.mxu1 %v1458_v47  ;;  %v2639_v60 = vadd.f32 %v1083_v18, %v1081_v49  ;;  %v1123_v38 = vmul.f32 %v1122_v53, %v2634_v55  ;;  %v1041_v4 = vmul.f32 %v1040_v3, %v992_v26  ;;  %v1085_v34 = vadd.f32 -0.75, %v2550_v56  ;;  %v1380_v47 = vld [vmem:[#allocation10 + $0x48] sm:$0xff]  ;;  %v1539_v18 = vld [vmem:[#allocation10 + $0x90] sm:$0xff]  ;;  %v1537_v58 = vld [vmem:[#allocation10 + $0x80] sm:$0xff] }
 0x162   :  { %2093 = vmatmul.mubr.msk.f32.vlgmr.msra.gmra.mxu1 %vm1152_vm4, %v1116_v51  ;;  %2106 = vmatprep.subr.mxu1 %v2296_v0  ;;  %v1044_v8 = vmul.f32 %v1043_v1, %v992_v26  ;;  %v1087_v9 = vadd.f32 2.25, %v2553_v57  ;;  %v1046_v16 = vmul.f32 %v1045_v5, %v995_v63  ;;  %v1090_v30 = vadd.f32 -1.25, %v2550_v56  ;;  %v1776_v56 = vld [vmem:[#allocation10 + $0xf0] sm:$0xff]  ;;  %v1540_v51 = vld [vmem:[#allocation10 + $0x98] sm:$0xff] }
 0x163   :  { %v2154_v6 = vpop.eup %2153  ;;  %2107 = vmatpush3.msra.mxu1 %v1619_v54  ;;  %2114 = vmatprep.mubr.msk.f32.mxu1 %vm2297_vm0, %v2296_v0  ;;  %v1125_v7 = vmul.f32 %v1124_v62, %v2639_v60  ;;  %v1042_v13 = vadd.f32 %v1041_v4, %v1039_v2  ;;  %v1086_v20 = vmul.f32 %v1085_v34, %v1037_v45  ;;  %v1092_v21 = vadd.f32 2.75, %v2553_v57  ;;  %v1698_v3 = vld [vmem:[#allocation10 + $0xd8] sm:$0xff]  ;;  %v1697_v62 = vld [vmem:[#allocation10 + $0xd0] sm:$0xff] }
 0x164   :  { %2108 = vmatprep.subr.mxu1 %v2296_v0  ;;  %v1140_v11 = vadd.f32 1.0, %v2154_v6  ;;  %v1047_v24 = vadd.f32 %v1046_v16, %v1044_v8  ;;  %v1132_v32 = vadd.f32 -0.5, %v2562_v52  ;;  %v1134_v33 = vadd.f32 1.8333334, %v2568_v10 }
 0x165   :  { %2109 = vmatpush3.msra.mxu1 %v1618_v37  ;;  %v1088_v25 = vmul.f32 %v1087_v9, %v1042_v13  ;;  %v1091_v27 = vmul.f32 %v1090_v30, %v1042_v13  ;;  %v1126_v28 = vadd.f32 %v1125_v7, %v1123_v38  ;;  %v1107_v45 = vadd.f32 1.1666666, %v2562_v52  ;;  %v1695_v38 = vld [vmem:[#allocation10 + $0xc0] sm:$0xff] }
 0x166   :  { %2155 = vrcp.f32 %v1140_v11  ;;  %2110 = vmatprep.subr.mxu1 %v2296_v0  ;;  %v1093_v31 = vmul.f32 %v1092_v21, %v1047_v24  ;;  %v1109_v46 = vadd.f32 0.16666667, %v2568_v10  ;;  %v1117_v53 = vadd.f32 0.5, %v2562_v52 }
 0x167   :  { %2111 = vmatpush3.msra.mxu1 %v1617_v12  ;;  %v2657_v19 = vadd.f32 %v1088_v25, %v1086_v20  ;;  %v1108_v17 = vmul.f32 %v1107_v45, %v2594_v61  ;;  %v1119_v61 = vadd.f32 0.8333333, %v2568_v10  ;;  %v1127_v63 = vadd.f32 -0.16666667, %v2562_v52 }
 0x168   :  { %2112 = vmatprep.subr.mxu1 %v2296_v0  ;;  %v1094_v57 = vadd.f32 %v1093_v31, %v1091_v27  ;;  %v1110_v49 = vmul.f32 %v1109_v46, %v2605_v15  ;;  %v1538_v15 = vld [vmem:[#allocation10 + $0x88] sm:$0xff]  ;;  %v1118_v26 = vmul.f32 %v1117_v53, %v2610_v22  ;;  %v1129_v22 = vadd.f32 1.5, %v2568_v10 }
 0x169   :  { %2113 = vmatpush3.msra.mxu1 %v1616_v23  ;;  %v1133_v36 = vmul.f32 %v1132_v32, %v2657_v19  ;;  %v1120_v54 = vmul.f32 %v1119_v61, %v2634_v55  ;;  %v1696_v55 = vld [vmem:[#allocation10 + $0xc8] sm:$0xff]  ;;  %v1128_v1 = vmul.f32 %v1127_v63, %v2639_v60 }
 0x16a   :  { %2115 = vmatmul.mubr.msk.f32.vlgmr.msra.gmra.mxu1 %vm1152_vm4, %v1126_v28  ;;  %2128 = vmatprep.subr.mxu1 %v2296_v0  ;;  %v1135_v39 = vmul.f32 %v1134_v33, %v1094_v57  ;;  %v1111_v50 = vadd.f32 %v1110_v49, %v1108_v17  ;;  %v1130_v37 = vmul.f32 %v1129_v22, %v2657_v19 }
 0x16b   :  { %2129 = vmatpush3.msra.mxu1 %v1777_v29  ;;  %2136 = vmatprep.mubr.msk.f32.mxu1 %vm2297_vm0, %v2296_v0  ;;  %v1121_v59 = vadd.f32 %v1120_v54, %v1118_v26 }
 0x16c   :  { %2130 = vmatprep.subr.mxu1 %v2296_v0  ;;  %v1136_v41 = vadd.f32 %v1135_v39, %v1133_v36  ;;  %v1131_v52 = vadd.f32 %v1130_v37, %v1128_v1 }
 0x16d   :  { %2131 = vmatpush3.msra.mxu1 %v1776_v56 }
 0x16e   :  { %2132 = vmatprep.subr.mxu1 %v2296_v0 }
 0x16f   :  { %2133 = vmatpush3.msra.mxu1 %v1775_v35 }
 0x170   :  { %2134 = vmatprep.subr.mxu1 %v2296_v0 }
 0x171   :  { %2135 = vmatpush3.msra.mxu1 %v1774_v40 }
 0x172   :  { %2137 = vmatmul.mubr.msk.f32.vlgmr.msra.gmra.mxu1 %vm1152_vm4, %v1136_v41 }
 0x173   :  { %v2156_v42 = vpop.eup %2155 }
 0x174   :  { %v1143_v43 = vmul.f32 %v2156_v42, %v2531_v48  ;;  %v1379_v48 = vld [vmem:[#allocation10 + $0x40] sm:$0xff] }
 0x176   :  { %2060 = vmatmul.mubr.msk.f32.vlgmr.msra.gmra.mxu0 %vm1152_vm4, %v1143_v43 }
 0x177   :  { %2074 = vmatpush3.msra.mxu0 %v1382_v44  ;;  %2081 = vmatprep.mubr.msk.f32.mxu0 %vm2297_vm0, %v2296_v0 }
 0x178   :  { %2075 = vmatprep.subr.mxu0 %v2296_v0 }
 0x179   :  { %2076 = vmatpush3.msra.mxu0 %v1381_v14 }
 0x17a   :  { %2077 = vmatprep.subr.mxu0 %v2296_v0 }
 0x17b   :  { %2078 = vmatpush3.msra.mxu0 %v1380_v47 }
 0x17c   :  { %2079 = vmatprep.subr.mxu0 %v2296_v0 }
 0x17d   :  { %2080 = vmatpush3.msra.mxu0 %v1379_v48 }
 0x17e   :  { %2082 = vmatmul.mubr.msk.f32.vlgmr.msra.gmra.mxu0 %vm1152_vm4, %v1111_v50  ;;  %2095 = vmatprep.subr.mxu0 %v2296_v0 }
 0x17f   :  { %2096 = vmatpush3.msra.mxu0 %v1540_v51  ;;  %2103 = vmatprep.mubr.msk.f32.mxu0 %vm2297_vm0, %v2296_v0 }
 0x180   :  { %2097 = vmatprep.subr.mxu0 %v2296_v0 }
 0x181   :  { %2098 = vmatpush3.msra.mxu0 %v1539_v18 }
 0x182   :  { %2099 = vmatprep.subr.mxu0 %v2296_v0 }
 0x183   :  { %2100 = vmatpush3.msra.mxu0 %v1538_v15 }
 0x184   :  { %2101 = vmatprep.subr.mxu0 %v2296_v0 }
 0x185   :  { %2102 = vmatpush3.msra.mxu0 %v1537_v58 }
 0x186   :  { %2104 = vmatmul.mubr.msk.f32.vlgmr.msra.gmra.mxu0 %vm1152_vm4, %v1121_v59  ;;  %2117 = vmatprep.subr.mxu0 %v2296_v0 }
 0x187   :  { %2118 = vmatpush3.msra.mxu0 %v1698_v3  ;;  %2125 = vmatprep.mubr.msk.f32.mxu0 %vm2297_vm0, %v2296_v0 }
 0x188   :  { %2119 = vmatprep.subr.mxu0 %v2296_v0 }
 0x189   :  { %2120 = vmatpush3.msra.mxu0 %v1697_v62 }
 0x18a   :  { %2121 = vmatprep.subr.mxu0 %v2296_v0 }
 0x18b   :  { %2122 = vmatpush3.msra.mxu0 %v1696_v55 }
 0x18c   :  { %2123 = vmatprep.subr.mxu0 %v2296_v0 }
 0x18d   :  { %2124 = vmatpush3.msra.mxu0 %v1695_v38 }
 0x18e   :  { %2126 = vmatmul.mubr.msk.f32.vlgmr.msra.gmra.mxu0 %vm1152_vm4, %v1131_v52 }
 0x212   :  { %v1222_v10 = vpop.f32.mrf.mxu1 }
 0x214   :  { %v2050_v2 = vpop.f32.mrf.mxu1 }
 0x21a   :  { %v1373_v4 = vpop.f32.mrf.mxu1 }
 0x21c   :  { %v2072_v5 = vpop.f32.mrf.mxu1 }
 0x222   :  { %v1531_v6 = vpop.f32.mrf.mxu1 }
 0x224   :  { %v2094_v7 = vpop.f32.mrf.mxu1 }
 0x22a   :  { %v1689_v60 = vpop.f32.mrf.mxu1 }
 0x22c   :  { %v2116_v8 = vpop.f32.mrf.mxu1 }
 0x232   :  { %v1847_v34 = vpop.f32.mrf.mxu1 }
 0x234   :  { %v2138_v9 = vpop.f32.mrf.mxu1 }
 0x236   :  { %v1295_v11 = vpop.f32.mrf.mxu0 }
 0x237   :  { %v1296_v13 = vadd.f32 %v1295_v11, %v1222_v10 }
 0x238   :  { %v2061_v12 = vpop.f32.mrf.mxu0 }
 0x239   :  { %v1377_v0 = vadd.f32 %v1373_v4, %v1296_v13 }
 0x23e   :  { %v1452_v16 = vpop.f32.mrf.mxu0 }
 0x23f   :  { %v1456_v20 = vadd.f32 %v1452_v16, %v1377_v0 }
 0x240   :  { %v2083_v30 = vpop.f32.mrf.mxu0 }
 0x241   :  { %v1535_v23 = vadd.f32 %v1531_v6, %v1456_v20 }
 0x246   :  { %v1610_v21 = vpop.f32.mrf.mxu0 }
 0x247   :  { %v1614_v25 = vadd.f32 %v1610_v21, %v1535_v23 }
 0x248   :  { %v2105_v24 = vpop.f32.mrf.mxu0 }
 0x249   :  { %v1693_v27 = vadd.f32 %v1689_v60, %v1614_v25 }
 0x24e   :  { %v1768_v28 = vpop.f32.mrf.mxu0 }
 0x24f   :  { %v1772_v29 = vadd.f32 %v1768_v28, %v1693_v27 }
 0x250   :  { %v2127_v19 = vpop.f32.mrf.mxu0 }
 0x251   :  { %v1851_v31 = vadd.f32 %v1847_v34, %v1772_v29 }
 0x253   :  { %v1853_v56 = vand.u32 2147483647, %v1851_v31  ;;  %v1852_v44 = vmax.f32 %v1851_v31, 0.0 }
 0x255   :  { %v1854_v57 = vsub.f32 0.0, %v1853_v56 }
 0x257   :  { %v1855_v32 = vmul.f32 1.442695, %v1854_v57 }
 0x259   :  { %2157 = vpow2.f32 %v1855_v32 }
 0x266   :  { %v2158_v33 = vpop.eup %2157 }
 0x267   :  { %v1857_v35 = vadd.f32 1.0, %v2158_v33  ;;  %v1860_v36 = vmul.f32 -0.5, %v2158_v33  ;;  %v1863_v40 = vand.u32 2147483647, %v2158_v33 }
 0x269   :  { %2159 = vlog2.f32 %v1857_v35  ;;  %v1861_v39 = vadd.f32 1.0, %v1860_v36  ;;  %vm1864_vm0 = vcmp.lt.f32.partialorder %v1863_v40, 0.0004427343 }
 0x26b   :  { %v1862_v43 = vmul.f32 %v2158_v33, %v1861_v39 }
 0x276   :  { %v2160_v41 = vpop.eup %2159 }
 0x277   :  { %v1859_v42 = vmul.f32 0.6931472, %v2160_v41 }
 0x279   :  { %v1865_v14 = vsel %vm1864_vm0, %v1862_v43, %v1859_v42 }
 0x27a   :  { %v1866_v45 = vadd.f32 %v1865_v14, %v1852_v44 }
 0x27c   :  { %1867 = vst [vmem:[#allocation11] sm:$0xff] %v1866_v45 }
 0x27d   :  { %2272 = shalt.err (!%p2269_p1)
}
 0x27e   :  { %1877 = dma.vmem_to_hbm [thread:$0]  %s1875_s4, 128, %s2712_s5, [#allocation4]  }
 0x27f   :  { %2287 = dma.done.wait [#allocation4], 128  }
 0x280   :  { %2288 = vsyncadd [#allocation4], 4294967168 }
 0x281   :  { %1881 = vsyncpa [#allocation3], 1 }
 0x282   :  { %1882 = vsyncpa [#allocation6], 1 }
 0x283   :  { %1883 = vsyncpa [#allocation9], 1 }
 0x284   :  { %1884 = vsyncpa [#allocation4], 1 }

</bundles_post_ra>
